<compile_context>
chip_gen: v7x
topology: tpu7x:2x2x1
jax: 0.10.0
libtpu: 0.0.40
codegen_flags: <defaults>
</compile_context>

<pallas_src>
import functools

import numpy as np
import jax
import jax.numpy as jnp
from jax.experimental import pallas as pl
from jax.experimental.pallas import tpu as pltpu

LEAKY_SLOPE = 0.01          # nn.LeakyReLU() default negative_slope
_SUBLANE_PACK = 16          # bf16 packs 16 sublanes per vreg
_TARGET_TILE_ROWS = 256     # target output rows per M tile (256-512 at real shapes)
_TAIL_FUSE_MAX_PIXELS = 256 # fuse a conv into the tail kernel once B*H*W <= this


# ------------------------------- helpers ----------------------------------------
def _round_up(x, m):
    return (x + m - 1) // m * m


@functools.lru_cache(maxsize=None)
def _vmem_limit_bytes():
    try:
        cap = int(pltpu.get_tpu_info().vmem_capacity_bytes)
    except Exception:          # pragma: no cover - conservative fallback
        cap = 64 * 1024 * 1024
    # 96 MiB on v5e/v6e (128 MiB physical), 48 MiB on v7x (64 MiB physical).
    return int(min(96 * 1024 * 1024, (cap * 3) // 4))


def _compiler_params(dims=None):
    kwargs = dict(vmem_limit_bytes=_vmem_limit_bytes())
    if dims is not None:
        kwargs["dimension_semantics"] = dims
    return pltpu.CompilerParams(**kwargs)


def _pick_tile_rows(Ho, Wo, target_rows):
    """Largest divisor of Ho whose tile (rows*Wo) fits the target and keeps the
    output block 16-row aligned (or is the whole extent)."""
    divisors = [d for d in range(1, Ho + 1) if Ho % d == 0]
    ok = [d for d in divisors
          if d * Wo <= max(target_rows, Wo)
          and (d == Ho or (d * Wo) % _SUBLANE_PACK == 0)]
    return max(ok) if ok else Ho


# ----------------------------- Pallas kernels ------------------------------------
def _conv_down_kernel(x_ref, w_hbm, b_ref, o_ref, w_vmem, w_sem, *,
                      mt, wo, e_pad, slope):
    """Fused stride-2 conv3x3 + bias + LeakyReLU for one (batch, row-tile) block.

    x_ref : (Tt, 3*Cin) bf16 per-tile slab: [even-row taps | pad | odd-row taps];
            each 3x3 kernel row is a contiguous row slice of the slab.
    w_hbm : (3, 3*Cin, Cout) bf16 in HBM (ANY) -- copied once per batch into w_vmem.
    b_ref : (1, Cout) f32
    o_ref : (mt, Cout) bf16
    """
    # Single-buffered constant weights: copy HBM -> VMEM scratch once per batch
    # row of the grid (the m axis is "arbitrary", so m==0 always runs first on
    # whichever core owns this batch element).
    @pl.when(pl.program_id(1) == 0)
    def _():
        cp = pltpu.make_async_copy(w_hbm, w_vmem, w_sem)
        cp.start()
        cp.wait()

    # Three bf16 MXU matmuls (one per kernel row), f32 accumulation.
    acc = jnp.dot(x_ref[pl.ds(0, mt), :], w_vmem[0],
                  preferred_element_type=jnp.float32)            # kh = 0
    acc += jnp.dot(x_ref[pl.ds(e_pad, mt), :], w_vmem[1],
                   preferred_element_type=jnp.float32)           # kh = 1
    acc += jnp.dot(x_ref[pl.ds(wo, mt), :], w_vmem[2],
                   preferred_element_type=jnp.float32)           # kh = 2
    acc += b_ref[...]
    acc = jnp.where(acc >= 0.0, acc, slope * acc)                # LeakyReLU in f32 (VPU)
    o_ref[...] = acc.astype(o_ref.dtype)


def _fused_tail_kernel(*refs, n_layers, slope):
    """Remaining small stride-2 convs + EqualLinear, batch folded into MXU M.

    refs = [x, (S_1, W_1, b_1), ..., (S_L, W_L, b_L), lin_w, lin_b, out]
      x     : (B*Hi*Wi, C) bf16
      S_l   : (9, B*Mo, B*Min) bf16 constant 0/1 tap-selection (block-diag in B)
      W_l   : (9, Cin_l, Cout) bf16, b_l : (1, Cout) f32
      lin_w : (Cout, Cout) bf16 (equalized-lr scale pre-folded), lin_b : (1, Cout) f32
      out   : (B*Ho_L*Wo_L, Cout) f32
    """
    x_ref = refs[0]
    lin_w_ref = refs[1 + 3 * n_layers]
    lin_b_ref = refs[2 + 3 * n_layers]
    o_ref = refs[3 + 3 * n_layers]

    y = x_ref[...]                                   # bf16 activations
    for l in range(n_layers):
        s_ref = refs[1 + 3 * l]
        w_ref = refs[2 + 3 * l]
        b_ref = refs[3 + 3 * l]
        rows_out = s_ref.shape[1]
        cout = w_ref.shape[-1]
        acc = jnp.zeros((rows_out, cout), jnp.float32)
        for k in range(9):                           # 9 taps = (kh, kw)
            taps = jnp.dot(s_ref[k], y,
                           preferred_element_type=jnp.float32).astype(jnp.bfloat16)
            acc = acc + jnp.dot(taps, w_ref[k],
                                preferred_element_type=jnp.float32)
        acc = acc + b_ref[...]
        acc = jnp.where(acc >= 0.0, acc, slope * acc)
        y = acc.astype(jnp.bfloat16)

    out = jnp.dot(y, lin_w_ref[...], preferred_element_type=jnp.float32)
    out = out + lin_b_ref[...]
    o_ref[...] = out


# ------------------------------ XLA layout glue ----------------------------------
def _stack_row_tap_tiles(x_nhwc, tr):
    """(B, H, W, C) -> (B*n_tiles, Tt, 3C) bf16 per-tile even/odd row-tap slabs.

    For output-row tile t and local output row j:
        kh=0 taps -> slab rows [j*Wo, (j+1)*Wo)            (even slab, offset 0)
        kh=2 taps -> slab rows [Wo + j*Wo, Wo + (j+1)*Wo)  (even slab, offset Wo)
        kh=1 taps -> slab rows [e_pad + j*Wo, ...)         (odd slab, 16-aligned)
    Data amplification ~1.5x (vs 2.25x for a full im2col); only used for the
    "head" layers whose input does not fit the fused-tail kernel.
    """
    B, H, W, C = x_nhwc.shape
    Ho, Wo = H // 2, W // 2
    n_tiles = Ho // tr
    xp = jnp.pad(x_nhwc.astype(jnp.bfloat16), ((0, 0), (1, 1), (1, 1), (0, 0)))
    # stride-2 gather of the three kernel columns -> channel blocks ordered (kw, c)
    cols = jnp.concatenate(
        [xp[:, :, kw:kw + 2 * Wo:2, :] for kw in range(3)], axis=-1)   # (B, H+2, Wo, 3C)
    even = cols[:, 0::2]      # padded even rows 0,2,...,H   -> (B, Ho+1, Wo, 3C)
    odd = cols[:, 1::2]       # padded odd rows 1,3,...,H+1  -> (B, Ho+1, Wo, 3C)

    e_rows = (tr + 1) * Wo
    e_pad = _round_up(e_rows, _SUBLANE_PACK)
    tiles = []
    for t in range(n_tiles):
        ev = even[:, t * tr:t * tr + tr + 1].reshape(B, e_rows, 3 * C)
        if e_pad != e_rows:
            ev = jnp.pad(ev, ((0, 0), (0, e_pad - e_rows), (0, 0)))
        od = odd[:, t * tr:t * tr + tr].reshape(B, tr * Wo, 3 * C)
        tiles.append(jnp.concatenate([ev, od], axis=1))
    stacked = jnp.stack(tiles, axis=1)                # (B, n_tiles, Tt, 3C)
    Tt = e_pad + tr * Wo
    return stacked.reshape(B * n_tiles, Tt, 3 * C), e_pad


@functools.lru_cache(maxsize=None)
def _tap_select_matrix(B, Hi, Wi):
    """Constant 0/1 selection matrices S[k] with out = sum_k (S[k] @ x) @ W[k]
    implementing a 3x3/stride-2/pad-1 conv on a batch-folded (B*Hi*Wi, C) input."""
    Ho, Wo = Hi // 2, Wi // 2
    sel = np.zeros((9, B * Ho * Wo, B * Hi * Wi), np.float32)
    for kh in range(3):
        for kw in range(3):
            k = 3 * kh + kw
            for oh in range(Ho):
                ih = 2 * oh + kh - 1
                if not (0 <= ih < Hi):
                    continue
                for ow in range(Wo):
                    iw = 2 * ow + kw - 1
                    if not (0 <= iw < Wi):
                        continue
                    for b in range(B):
                        sel[k, b * Ho * Wo + oh * Wo + ow,
                            b * Hi * Wi + ih * Wi + iw] = 1.0
    return sel


# ---------------------------- pallas_call wrappers --------------------------------
def conv_down(x_nhwc, w_rows, b_row, tile_rows_target=_TARGET_TILE_ROWS):
    """One stride-2 conv3x3 + LeakyReLU layer, M-tiled over output rows.

    Returns ((B, Ho*Wo, Cout) bf16, (Ho, Wo))."""
    B, H, W, C = x_nhwc.shape
    assert H % 2 == 0 and W % 2 == 0, "row-tap layout assumes even spatial dims"
    Ho, Wo = H // 2, W // 2
    tr = _pick_tile_rows(Ho, Wo, tile_rows_target)
    n_tiles = Ho // tr
    stacked, e_pad = _stack_row_tap_tiles(x_nhwc, tr)     # (B*n_tiles, Tt, 3C)
    Tt, K3 = stacked.shape[1], stacked.shape[2]
    N = w_rows.shape[-1]
    Mt = tr * Wo

    kernel = functools.partial(_conv_down_kernel, mt=Mt, wo=Wo, e_pad=e_pad,
                               slope=LEAKY_SLOPE)
    y = pl.pallas_call(
        kernel,
        out_shape=jax.ShapeDtypeStruct((B, n_tiles * Mt, N), jnp.bfloat16),
        grid=(B, n_tiles),
        in_specs=[
            # per-(batch, row-tile) activation slab (double-buffered by Pallas)
            pl.BlockSpec((None, Tt, K3), lambda b, m: (b * n_tiles + m, 0, 0)),
            # constant weights: stay in HBM, single-buffered via scratch copy
            pl.BlockSpec(memory_space=pl.ANY),
            # bias row (tiny; default pipelining is fine)
            pl.BlockSpec((1, N), lambda b, m: (0, 0)),
        ],
        out_specs=pl.BlockSpec((None, Mt, N), lambda b, m: (b, m, 0)),
        scratch_shapes=[
            pltpu.VMEM((3, K3, N), jnp.bfloat16),     # single-buffered weights
            pltpu.SemaphoreType.DMA(()),
        ],
        compiler_params=_compiler_params(("parallel", "arbitrary")),
    )(stacked, w_rows, b_row)
    return y, (Ho, Wo)


def fused_tail(x_nhwc, tail_layers, lin_w_bf16, lin_b_row):
    """All remaining small convs + EqualLinear in one kernel (batch folded into M)."""
    B, H, W, C = x_nhwc.shape
    x2 = x_nhwc.reshape(B * H * W, C)
    inputs = [x2]
    h, w = H, W
    for layer in tail_layers:
        assert h % 2 == 0 and w % 2 == 0, "row-tap/tap-select assumes even spatial dims"
        sel = jnp.asarray(_tap_select_matrix(B, h, w), jnp.bfloat16)
        inputs += [sel, layer["w_taps"], layer["b_row"]]
        h, w = h // 2, w // 2
    inputs += [lin_w_bf16, lin_b_row]

    out_rows = B * h * w
    out_ch = lin_w_bf16.shape[-1]
    kernel = functools.partial(_fused_tail_kernel, n_layers=len(tail_layers),
                               slope=LEAKY_SLOPE)
    return pl.pallas_call(
        kernel,
        out_shape=jax.ShapeDtypeStruct((out_rows, out_ch), jnp.float32),
        compiler_params=_compiler_params(),
    )(*inputs)


# -------------------------------- parameters --------------------------------------
def init_to_style_params(key, in_channel, out_channel, resolution, lr_mult=1.0):
    """Deterministic synthetic init mirroring ToStyle.__init__ shapes.

    Packed / pre-scaled forms are built once here (perf feedback #11) so the
    jitted forward contains no per-call weight reshuffling."""
    n_convs = int(np.log2(resolution))         # 1 + (log2(res) - 1)
    keys = jax.random.split(key, 2 * n_convs + 1)
    convs = []
    cin = in_channel
    for l in range(n_convs):
        std = 1.0 / np.sqrt(9 * cin)
        w = jax.random.normal(keys[2 * l], (3, 3, cin, out_channel), jnp.float32) * std
        b = jax.random.normal(keys[2 * l + 1], (out_channel,), jnp.float32) * 0.01
        convs.append({
            "w_hwio": w,                                              # reference
            "b": b,                                                   # reference
            "w_rows": w.reshape(3, 3 * cin, out_channel).astype(jnp.bfloat16),
            "w_taps": w.reshape(9, cin, out_channel).astype(jnp.bfloat16),
            "b_row": b.reshape(1, out_channel).astype(jnp.float32),
        })
        cin = out_channel
    # EqualLinear(out, out, lr_mult): weight ~ randn(out,in)/lr_mult; bias = 0;
    # runtime scale = lr_mult/sqrt(in); bias scaled by lr_mult.
    lin_w_oi = jax.random.normal(keys[-1], (out_channel, out_channel), jnp.float32) / lr_mult
    lin_b = jnp.zeros((out_channel,), jnp.float32)
    scale = (1.0 / np.sqrt(out_channel)) * lr_mult
    lin_w_io = lin_w_oi.T
    return {
        "convs": convs,
        "lin_w_io": lin_w_io,
        "lin_b": lin_b,
        "lin_scale": jnp.float32(scale),
        "lr_mult": jnp.float32(lr_mult),
        # pre-folded EqualLinear params used by the kernels (feedback #11)
        "lin_w_scaled": (lin_w_io * scale).astype(jnp.bfloat16),
        "lin_b_scaled": (lin_b * lr_mult).reshape(1, out_channel).astype(jnp.float32),
    }


# ---------------------------------- forward ----------------------------------------
@functools.partial(jax.jit, static_argnames=("tile_rows_target",))
def to_style_forward(x_nchw, params, tile_rows_target=_TARGET_TILE_ROWS):
    """ToStyle.forward: [conv3x3/s2 + LeakyReLU] * log2(res) -> view -> EqualLinear."""
    x = jnp.transpose(x_nchw, (0, 2, 3, 1)).astype(jnp.bfloat16)    # NCHW -> NHWC bf16
    convs = params["convs"]
    n = len(convs)
    B = x.shape[0]

    li = 0
    while li < n:
        # Hand the rest of the net to the fused tail once the activation is small
        # enough to live in VMEM (always keep at least one tiled "head" layer).
        if li >= 1 and B * x.shape[1] * x.shape[2] <= _TAIL_FUSE_MAX_PIXELS:
            break
        layer = convs[li]
        y, (Ho, Wo) = conv_down(x, layer["w_rows"], layer["b_row"], tile_rows_target)
        x = y.reshape(B, Ho, Wo, y.shape[-1])
        li += 1

    return fused_tail(x, convs[li:], params["lin_w_scaled"], params["lin_b_scaled"])


# ----------------------------- pure-JAX reference -----------------------------------
def to_style_reference(x_nchw, params):
    x = x_nchw
    for layer in params["convs"]:
        x = jax.lax.conv_general_dilated(
            x, layer["w_hwio"], window_strides=(2, 2), padding=((1, 1), (1, 1)),
            dimension_numbers=("NCHW", "HWIO", "NCHW"),
            precision=jax.lax.Precision.HIGHEST,
        )
        x = x + layer["b"].reshape(1, -1, 1, 1)
        x = jnp.where(x >= 0.0, x, LEAKY_SLOPE * x)
    out_channel = params["lin_b"].shape[0]
    feat = x.reshape(-1, out_channel)
    w_eq = params["lin_w_io"] * params["lin_scale"]
    b_eq = params["lin_b"] * params["lr_mult"]
    return jnp.dot(feat, w_eq, precision=jax.lax.Precision.HIGHEST) + b_eq


# ------------------------------------ main ------------------------------------------
if __name__ == "__main__":
    B, IN_CH, OUT_CH, RES = 2, 4, 8, 16   # small shapes consistent with the module

    key = jax.random.PRNGKey(0)
    k_x, k_p = jax.random.split(key)
    x = jax.random.normal(k_x, (B, IN_CH, RES, RES), jnp.float32)
    params = init_to_style_params(k_p, IN_CH, OUT_CH, RES)

    ref = jax.block_until_ready(to_style_reference(x, params))

    # Default config: single M tile per batch element for the 8x8 first-layer output.
    out = jax.block_until_ready(to_style_forward(x, params))
    assert out.shape == (B, OUT_CH), out.shape
    np.testing.assert_allclose(np.asarray(out), np.asarray(ref), rtol=2e-2, atol=2e-2)

    # Also exercise the multi-tile M-tiled path (2 output-row tiles in layer 0,
    # grid=(B, 2)) to validate the halo'd tile layout and the single-buffered
    # weight scratch across m-steps.
    out_tiled = jax.block_until_ready(to_style_forward(x, params, tile_rows_target=32))
    np.testing.assert_allclose(np.asarray(out_tiled), np.asarray(ref), rtol=2e-2, atol=2e-2)

    print("KERNEL_OK")
</pallas_src>

<mosaic_0001>
module attributes {stable_mosaic.version = 11 : i64} {
  func.func @_conv_down_kernel(%arg0: i32, %arg1: i32, %arg2: memref<1x144x12xbf16, #tpu.memory_space<vmem>>, %arg3: memref<3x12x8xbf16, #tpu.memory_space<any>>, %arg4: memref<1x8xf32, #tpu.memory_space<vmem>>, %arg5: memref<1x64x8xbf16, #tpu.memory_space<vmem>>, %arg6: memref<3x12x8xbf16, #tpu.memory_space<vmem>>, %arg7: memref<!tpu.dma_semaphore, #tpu.memory_space<semaphore_mem>>) attributes {dimension_semantics = [#tpu.dimension_semantics<parallel>, #tpu.dimension_semantics<arbitrary>], iteration_bounds = array<i64: 2, 1>, scalar_prefetch = 0 : i64, scratch_operands = 2 : i64, tpu.core_type = #tpu.core_type<tc>, window_params = [{transform_indices = @transform_0, window_bounds = array<i64: 1, 144, 12>}, {}, {pipeline_mode = #tpu.pipeline_mode<synchronous>, transform_indices = @transform_2, window_bounds = array<i64: 1, 8>}, {transform_indices = @transform_3, window_bounds = array<i64: 1, 64, 8>}]} {
    %c0_i32 = arith.constant 0 : i32
    %0 = arith.cmpi eq, %arg1, %c0_i32 : i32
    %1 = arith.extui %0 : i1 to i32
    %c0_i32_0 = arith.constant 0 : i32
    %2 = arith.cmpi ne, %1, %c0_i32_0 : i32
    scf.if %2 {
      tpu.enqueue_dma source(%arg3 : memref<3x12x8xbf16, #tpu.memory_space<any>>) target(%arg6 : memref<3x12x8xbf16, #tpu.memory_space<vmem>>) target_semaphore(%arg7 : memref<!tpu.dma_semaphore, #tpu.memory_space<semaphore_mem>>)
      tpu.wait_dma2 semaphore(%arg7 : memref<!tpu.dma_semaphore, #tpu.memory_space<semaphore_mem>>) src(%arg3 : memref<3x12x8xbf16, #tpu.memory_space<any>>) dst(%arg6 : memref<3x12x8xbf16, #tpu.memory_space<vmem>>)
    } else {
    }
    %c0 = arith.constant 0 : index
    %c0_1 = arith.constant 0 : index
    %c0_2 = arith.constant 0 : index
    %3 = vector.load %arg2[%c0, %c0_1, %c0_2] : memref<1x144x12xbf16, #tpu.memory_space<vmem>>, vector<1x64x12xbf16>
    %4 = vector.shape_cast %3 : vector<1x64x12xbf16> to vector<64x12xbf16>
    %c0_3 = arith.constant 0 : index
    %c0_4 = arith.constant 0 : index
    %c0_5 = arith.constant 0 : index
    %5 = vector.load %arg6[%c0_3, %c0_4, %c0_5] : memref<3x12x8xbf16, #tpu.memory_space<vmem>>, vector<1x12x8xbf16>
    %6 = vector.shape_cast %5 : vector<1x12x8xbf16> to vector<12x8xbf16>
    %cst = arith.constant dense<0.000000e+00> : vector<64x8xf32>
    %7 = tpu.matmul %4, %6, %cst {dimension_numbers = #tpu.dot_dimension_numbers<[1], [0], [0], [1], [0, 0, 1, 1], [], []>} : vector<64x12xbf16>, vector<12x8xbf16>, vector<64x8xf32> -> vector<64x8xf32>
    %c0_6 = arith.constant 0 : index
    %c80 = arith.constant 80 : index
    %c0_7 = arith.constant 0 : index
    %8 = vector.load %arg2[%c0_6, %c80, %c0_7] : memref<1x144x12xbf16, #tpu.memory_space<vmem>>, vector<1x64x12xbf16>
    %9 = vector.shape_cast %8 : vector<1x64x12xbf16> to vector<64x12xbf16>
    %c1 = arith.constant 1 : index
    %c0_8 = arith.constant 0 : index
    %c0_9 = arith.constant 0 : index
    %10 = vector.load %arg6[%c1, %c0_8, %c0_9] : memref<3x12x8xbf16, #tpu.memory_space<vmem>>, vector<1x12x8xbf16>
    %11 = vector.shape_cast %10 : vector<1x12x8xbf16> to vector<12x8xbf16>
    %cst_10 = arith.constant dense<0.000000e+00> : vector<64x8xf32>
    %12 = tpu.matmul %9, %11, %cst_10 {dimension_numbers = #tpu.dot_dimension_numbers<[1], [0], [0], [1], [0, 0, 1, 1], [], []>} : vector<64x12xbf16>, vector<12x8xbf16>, vector<64x8xf32> -> vector<64x8xf32>
    %13 = arith.addf %7, %12 : vector<64x8xf32>
    %c0_11 = arith.constant 0 : index
    %c8 = arith.constant 8 : index
    %c0_12 = arith.constant 0 : index
    %14 = vector.load %arg2[%c0_11, %c8, %c0_12] : memref<1x144x12xbf16, #tpu.memory_space<vmem>>, vector<1x64x12xbf16>
    %15 = vector.shape_cast %14 : vector<1x64x12xbf16> to vector<64x12xbf16>
    %c2 = arith.constant 2 : index
    %c0_13 = arith.constant 0 : index
    %c0_14 = arith.constant 0 : index
    %16 = vector.load %arg6[%c2, %c0_13, %c0_14] : memref<3x12x8xbf16, #tpu.memory_space<vmem>>, vector<1x12x8xbf16>
    %17 = vector.shape_cast %16 : vector<1x12x8xbf16> to vector<12x8xbf16>
    %cst_15 = arith.constant dense<0.000000e+00> : vector<64x8xf32>
    %18 = tpu.matmul %15, %17, %cst_15 {dimension_numbers = #tpu.dot_dimension_numbers<[1], [0], [0], [1], [0, 0, 1, 1], [], []>} : vector<64x12xbf16>, vector<12x8xbf16>, vector<64x8xf32> -> vector<64x8xf32>
    %19 = arith.addf %13, %18 : vector<64x8xf32>
    %c0_16 = arith.constant 0 : index
    %c0_17 = arith.constant 0 : index
    %20 = vector.load %arg4[%c0_16, %c0_17] : memref<1x8xf32, #tpu.memory_space<vmem>>, vector<1x8xf32>
    %21 = vector.broadcast %20 : vector<1x8xf32> to vector<64x8xf32>
    %22 = arith.addf %19, %21 : vector<64x8xf32>
    %cst_18 = arith.constant 0.000000e+00 : f32
    %23 = vector.broadcast %cst_18 : f32 to vector<64x8xf32>
    %24 = arith.cmpf oge, %22, %23 : vector<64x8xf32>
    %cst_19 = arith.constant 0.00999999977 : f32
    %25 = vector.broadcast %cst_19 : f32 to vector<64x8xf32>
    %26 = arith.mulf %25, %22 : vector<64x8xf32>
    %27 = arith.select %24, %22, %26 : vector<64x8xi1>, vector<64x8xf32>
    %28 = arith.truncf %27 : vector<64x8xf32> to vector<64x8xbf16>
    %c0_20 = arith.constant 0 : index
    %c0_21 = arith.constant 0 : index
    %c0_22 = arith.constant 0 : index
    %29 = vector.load %arg5[%c0_20, %c0_21, %c0_22] : memref<1x64x8xbf16, #tpu.memory_space<vmem>>, vector<1x64x8xbf16>
    %30 = vector.shape_cast %29 : vector<1x64x8xbf16> to vector<64x8xbf16>
    %31 = vector.shape_cast %28 : vector<64x8xbf16> to vector<1x64x8xbf16>
    tpu.vector_store %arg5[%c0_20, %c0_21, %c0_22], %31 {strides = array<i32>} : memref<1x64x8xbf16, #tpu.memory_space<vmem>>, vector<1x64x8xbf16>,
    return
  }
  func.func @transform_0(%arg0: i32, %arg1: i32) -> (i32, i32, i32) {
    %c1_i32 = arith.constant 1 : i32
    %0 = arith.muli %arg0, %c1_i32 : i32
    %1 = arith.addi %0, %arg1 : i32
    %c0_i32 = arith.constant 0 : i32
    %c0_i32_0 = arith.constant 0 : i32
    %c0_i32_1 = arith.constant 0 : i32
    return %1, %c0_i32, %c0_i32_0 : i32, i32, i32
  }
  func.func @transform_2(%arg0: i32, %arg1: i32) -> (i32, i32) {
    %c0_i32 = arith.constant 0 : i32
    %c0_i32_0 = arith.constant 0 : i32
    %c0_i32_1 = arith.constant 0 : i32
    return %c0_i32, %c0_i32_0 : i32, i32
  }
  func.func @transform_3(%arg0: i32, %arg1: i32) -> (i32, i32, i32) {
    %c0_i32 = arith.constant 0 : i32
    %c0_i32_0 = arith.constant 0 : i32
    return %arg0, %arg1, %c0_i32 : i32, i32, i32
  }
}

module attributes {stable_mosaic.version = 11 : i64} {
  func.func @_fused_tail_kernel(%arg0: memref<128x8xbf16, #tpu.memory_space<vmem>>, %arg1: memref<9x32x128xbf16, #tpu.memory_space<vmem>>, %arg2: memref<9x8x8xbf16, #tpu.memory_space<vmem>>, %arg3: memref<1x8xf32, #tpu.memory_space<vmem>>, %arg4: memref<9x8x32xbf16, #tpu.memory_space<vmem>>, %arg5: memref<9x8x8xbf16, #tpu.memory_space<vmem>>, %arg6: memref<1x8xf32, #tpu.memory_space<vmem>>, %arg7: memref<9x2x8xbf16, #tpu.memory_space<vmem>>, %arg8: memref<9x8x8xbf16, #tpu.memory_space<vmem>>, %arg9: memref<1x8xf32, #tpu.memory_space<vmem>>, %arg10: memref<8x8xbf16, #tpu.memory_space<vmem>>, %arg11: memref<1x8xf32, #tpu.memory_space<vmem>>, %arg12: memref<2x8xf32, #tpu.memory_space<vmem>>) attributes {dimension_semantics = [], scalar_prefetch = 0 : i64, scratch_operands = 0 : i64, tpu.core_type = #tpu.core_type<tc>} {
    %c0 = arith.constant 0 : index
    %c0_0 = arith.constant 0 : index
    %0 = vector.load %arg0[%c0, %c0_0] : memref<128x8xbf16, #tpu.memory_space<vmem>>, vector<128x8xbf16>
    %cst = arith.constant 0.000000e+00 : f32
    %1 = vector.broadcast %cst : f32 to vector<32x8xf32>
    %c0_1 = arith.constant 0 : index
    %c0_2 = arith.constant 0 : index
    %c0_3 = arith.constant 0 : index
    %2 = vector.load %arg1[%c0_1, %c0_2, %c0_3] : memref<9x32x128xbf16, #tpu.memory_space<vmem>>, vector<1x32x128xbf16>
    %3 = vector.shape_cast %2 : vector<1x32x128xbf16> to vector<32x128xbf16>
    %cst_4 = arith.constant dense<0.000000e+00> : vector<32x8xf32>
    %4 = tpu.matmul %3, %0, %cst_4 {dimension_numbers = #tpu.dot_dimension_numbers<[1], [0], [0], [1], [0, 0, 1, 1], [], []>} : vector<32x128xbf16>, vector<128x8xbf16>, vector<32x8xf32> -> vector<32x8xf32>
    %5 = arith.truncf %4 : vector<32x8xf32> to vector<32x8xbf16>
    %c0_5 = arith.constant 0 : index
    %c0_6 = arith.constant 0 : index
    %c0_7 = arith.constant 0 : index
    %6 = vector.load %arg2[%c0_5, %c0_6, %c0_7] : memref<9x8x8xbf16, #tpu.memory_space<vmem>>, vector<1x8x8xbf16>
    %7 = vector.shape_cast %6 : vector<1x8x8xbf16> to vector<8x8xbf16>
    %cst_8 = arith.constant dense<0.000000e+00> : vector<32x8xf32>
    %8 = tpu.matmul %5, %7, %cst_8 {dimension_numbers = #tpu.dot_dimension_numbers<[1], [0], [0], [1], [0, 0, 1, 1], [], []>} : vector<32x8xbf16>, vector<8x8xbf16>, vector<32x8xf32> -> vector<32x8xf32>
    %9 = arith.addf %1, %8 : vector<32x8xf32>
    %c1 = arith.constant 1 : index
    %c0_9 = arith.constant 0 : index
    %c0_10 = arith.constant 0 : index
    %10 = vector.load %arg1[%c1, %c0_9, %c0_10] : memref<9x32x128xbf16, #tpu.memory_space<vmem>>, vector<1x32x128xbf16>
    %11 = vector.shape_cast %10 : vector<1x32x128xbf16> to vector<32x128xbf16>
    %cst_11 = arith.constant dense<0.000000e+00> : vector<32x8xf32>
    %12 = tpu.matmul %11, %0, %cst_11 {dimension_numbers = #tpu.dot_dimension_numbers<[1], [0], [0], [1], [0, 0, 1, 1], [], []>} : vector<32x128xbf16>, vector<128x8xbf16>, vector<32x8xf32> -> vector<32x8xf32>
    %13 = arith.truncf %12 : vector<32x8xf32> to vector<32x8xbf16>
    %c1_12 = arith.constant 1 : index
    %c0_13 = arith.constant 0 : index
    %c0_14 = arith.constant 0 : index
    %14 = vector.load %arg2[%c1_12, %c0_13, %c0_14] : memref<9x8x8xbf16, #tpu.memory_space<vmem>>, vector<1x8x8xbf16>
    %15 = vector.shape_cast %14 : vector<1x8x8xbf16> to vector<8x8xbf16>
    %cst_15 = arith.constant dense<0.000000e+00> : vector<32x8xf32>
    %16 = tpu.matmul %13, %15, %cst_15 {dimension_numbers = #tpu.dot_dimension_numbers<[1], [0], [0], [1], [0, 0, 1, 1], [], []>} : vector<32x8xbf16>, vector<8x8xbf16>, vector<32x8xf32> -> vector<32x8xf32>
    %17 = arith.addf %9, %16 : vector<32x8xf32>
    %c2 = arith.constant 2 : index
    %c0_16 = arith.constant 0 : index
    %c0_17 = arith.constant 0 : index
    %18 = vector.load %arg1[%c2, %c0_16, %c0_17] : memref<9x32x128xbf16, #tpu.memory_space<vmem>>, vector<1x32x128xbf16>
    %19 = vector.shape_cast %18 : vector<1x32x128xbf16> to vector<32x128xbf16>
    %cst_18 = arith.constant dense<0.000000e+00> : vector<32x8xf32>
    %20 = tpu.matmul %19, %0, %cst_18 {dimension_numbers = #tpu.dot_dimension_numbers<[1], [0], [0], [1], [0, 0, 1, 1], [], []>} : vector<32x128xbf16>, vector<128x8xbf16>, vector<32x8xf32> -> vector<32x8xf32>
    %21 = arith.truncf %20 : vector<32x8xf32> to vector<32x8xbf16>
    %c2_19 = arith.constant 2 : index
    %c0_20 = arith.constant 0 : index
    %c0_21 = arith.constant 0 : index
    %22 = vector.load %arg2[%c2_19, %c0_20, %c0_21] : memref<9x8x8xbf16, #tpu.memory_space<vmem>>, vector<1x8x8xbf16>
    %23 = vector.shape_cast %22 : vector<1x8x8xbf16> to vector<8x8xbf16>
    %cst_22 = arith.constant dense<0.000000e+00> : vector<32x8xf32>
    %24 = tpu.matmul %21, %23, %cst_22 {dimension_numbers = #tpu.dot_dimension_numbers<[1], [0], [0], [1], [0, 0, 1, 1], [], []>} : vector<32x8xbf16>, vector<8x8xbf16>, vector<32x8xf32> -> vector<32x8xf32>
    %25 = arith.addf %17, %24 : vector<32x8xf32>
    %c3 = arith.constant 3 : index
    %c0_23 = arith.constant 0 : index
    %c0_24 = arith.constant 0 : index
    %26 = vector.load %arg1[%c3, %c0_23, %c0_24] : memref<9x32x128xbf16, #tpu.memory_space<vmem>>, vector<1x32x128xbf16>
    %27 = vector.shape_cast %26 : vector<1x32x128xbf16> to vector<32x128xbf16>
    %cst_25 = arith.constant dense<0.000000e+00> : vector<32x8xf32>
    %28 = tpu.matmul %27, %0, %cst_25 {dimension_numbers = #tpu.dot_dimension_numbers<[1], [0], [0], [1], [0, 0, 1, 1], [], []>} : vector<32x128xbf16>, vector<128x8xbf16>, vector<32x8xf32> -> vector<32x8xf32>
    %29 = arith.truncf %28 : vector<32x8xf32> to vector<32x8xbf16>
    %c3_26 = arith.constant 3 : index
    %c0_27 = arith.constant 0 : index
    %c0_28 = arith.constant 0 : index
    %30 = vector.load %arg2[%c3_26, %c0_27, %c0_28] : memref<9x8x8xbf16, #tpu.memory_space<vmem>>, vector<1x8x8xbf16>
    %31 = vector.shape_cast %30 : vector<1x8x8xbf16> to vector<8x8xbf16>
    %cst_29 = arith.constant dense<0.000000e+00> : vector<32x8xf32>
    %32 = tpu.matmul %29, %31, %cst_29 {dimension_numbers = #tpu.dot_dimension_numbers<[1], [0], [0], [1], [0, 0, 1, 1], [], []>} : vector<32x8xbf16>, vector<8x8xbf16>, vector<32x8xf32> -> vector<32x8xf32>
    %33 = arith.addf %25, %32 : vector<32x8xf32>
    %c4 = arith.constant 4 : index
    %c0_30 = arith.constant 0 : index
    %c0_31 = arith.constant 0 : index
    %34 = vector.load %arg1[%c4, %c0_30, %c0_31] : memref<9x32x128xbf16, #tpu.memory_space<vmem>>, vector<1x32x128xbf16>
    %35 = vector.shape_cast %34 : vector<1x32x128xbf16> to vector<32x128xbf16>
    %cst_32 = arith.constant dense<0.000000e+00> : vector<32x8xf32>
    %36 = tpu.matmul %35, %0, %cst_32 {dimension_numbers = #tpu.dot_dimension_numbers<[1], [0], [0], [1], [0, 0, 1, 1], [], []>} : vector<32x128xbf16>, vector<128x8xbf16>, vector<32x8xf32> -> vector<32x8xf32>
    %37 = arith.truncf %36 : vector<32x8xf32> to vector<32x8xbf16>
    %c4_33 = arith.constant 4 : index
    %c0_34 = arith.constant 0 : index
    %c0_35 = arith.constant 0 : index
    %38 = vector.load %arg2[%c4_33, %c0_34, %c0_35] : memref<9x8x8xbf16, #tpu.memory_space<vmem>>, vector<1x8x8xbf16>
    %39 = vector.shape_cast %38 : vector<1x8x8xbf16> to vector<8x8xbf16>
    %cst_36 = arith.constant dense<0.000000e+00> : vector<32x8xf32>
    %40 = tpu.matmul %37, %39, %cst_36 {dimension_numbers = #tpu.dot_dimension_numbers<[1], [0], [0], [1], [0, 0, 1, 1], [], []>} : vector<32x8xbf16>, vector<8x8xbf16>, vector<32x8xf32> -> vector<32x8xf32>
    %41 = arith.addf %33, %40 : vector<32x8xf32>
    %c5 = arith.constant 5 : index
    %c0_37 = arith.constant 0 : index
    %c0_38 = arith.constant 0 : index
    %42 = vector.load %arg1[%c5, %c0_37, %c0_38] : memref<9x32x128xbf16, #tpu.memory_space<vmem>>, vector<1x32x128xbf16>
    %43 = vector.shape_cast %42 : vector<1x32x128xbf16> to vector<32x128xbf16>
    %cst_39 = arith.constant dense<0.000000e+00> : vector<32x8xf32>
    %44 = tpu.matmul %43, %0, %cst_39 {dimension_numbers = #tpu.dot_dimension_numbers<[1], [0], [0], [1], [0, 0, 1, 1], [], []>} : vector<32x128xbf16>, vector<128x8xbf16>, vector<32x8xf32> -> vector<32x8xf32>
    %45 = arith.truncf %44 : vector<32x8xf32> to vector<32x8xbf16>
    %c5_40 = arith.constant 5 : index
    %c0_41 = arith.constant 0 : index
    %c0_42 = arith.constant 0 : index
    %46 = vector.load %arg2[%c5_40, %c0_41, %c0_42] : memref<9x8x8xbf16, #tpu.memory_space<vmem>>, vector<1x8x8xbf16>
    %47 = vector.shape_cast %46 : vector<1x8x8xbf16> to vector<8x8xbf16>
    %cst_43 = arith.constant dense<0.000000e+00> : vector<32x8xf32>
    %48 = tpu.matmul %45, %47, %cst_43 {dimension_numbers = #tpu.dot_dimension_numbers<[1], [0], [0], [1], [0, 0, 1, 1], [], []>} : vector<32x8xbf16>, vector<8x8xbf16>, vector<32x8xf32> -> vector<32x8xf32>
    %49 = arith.addf %41, %48 : vector<32x8xf32>
    %c6 = arith.constant 6 : index
    %c0_44 = arith.constant 0 : index
    %c0_45 = arith.constant 0 : index
    %50 = vector.load %arg1[%c6, %c0_44, %c0_45] : memref<9x32x128xbf16, #tpu.memory_space<vmem>>, vector<1x32x128xbf16>
    %51 = vector.shape_cast %50 : vector<1x32x128xbf16> to vector<32x128xbf16>
    %cst_46 = arith.constant dense<0.000000e+00> : vector<32x8xf32>
    %52 = tpu.matmul %51, %0, %cst_46 {dimension_numbers = #tpu.dot_dimension_numbers<[1], [0], [0], [1], [0, 0, 1, 1], [], []>} : vector<32x128xbf16>, vector<128x8xbf16>, vector<32x8xf32> -> vector<32x8xf32>
    %53 = arith.truncf %52 : vector<32x8xf32> to vector<32x8xbf16>
    %c6_47 = arith.constant 6 : index
    %c0_48 = arith.constant 0 : index
    %c0_49 = arith.constant 0 : index
    %54 = vector.load %arg2[%c6_47, %c0_48, %c0_49] : memref<9x8x8xbf16, #tpu.memory_space<vmem>>, vector<1x8x8xbf16>
    %55 = vector.shape_cast %54 : vector<1x8x8xbf16> to vector<8x8xbf16>
    %cst_50 = arith.constant dense<0.000000e+00> : vector<32x8xf32>
    %56 = tpu.matmul %53, %55, %cst_50 {dimension_numbers = #tpu.dot_dimension_numbers<[1], [0], [0], [1], [0, 0, 1, 1], [], []>} : vector<32x8xbf16>, vector<8x8xbf16>, vector<32x8xf32> -> vector<32x8xf32>
    %57 = arith.addf %49, %56 : vector<32x8xf32>
    %c7 = arith.constant 7 : index
    %c0_51 = arith.constant 0 : index
    %c0_52 = arith.constant 0 : index
    %58 = vector.load %arg1[%c7, %c0_51, %c0_52] : memref<9x32x128xbf16, #tpu.memory_space<vmem>>, vector<1x32x128xbf16>
    %59 = vector.shape_cast %58 : vector<1x32x128xbf16> to vector<32x128xbf16>
    %cst_53 = arith.constant dense<0.000000e+00> : vector<32x8xf32>
    %60 = tpu.matmul %59, %0, %cst_53 {dimension_numbers = #tpu.dot_dimension_numbers<[1], [0], [0], [1], [0, 0, 1, 1], [], []>} : vector<32x128xbf16>, vector<128x8xbf16>, vector<32x8xf32> -> vector<32x8xf32>
    %61 = arith.truncf %60 : vector<32x8xf32> to vector<32x8xbf16>
    %c7_54 = arith.constant 7 : index
    %c0_55 = arith.constant 0 : index
    %c0_56 = arith.constant 0 : index
    %62 = vector.load %arg2[%c7_54, %c0_55, %c0_56] : memref<9x8x8xbf16, #tpu.memory_space<vmem>>, vector<1x8x8xbf16>
    %63 = vector.shape_cast %62 : vector<1x8x8xbf16> to vector<8x8xbf16>
    %cst_57 = arith.constant dense<0.000000e+00> : vector<32x8xf32>
    %64 = tpu.matmul %61, %63, %cst_57 {dimension_numbers = #tpu.dot_dimension_numbers<[1], [0], [0], [1], [0, 0, 1, 1], [], []>} : vector<32x8xbf16>, vector<8x8xbf16>, vector<32x8xf32> -> vector<32x8xf32>
    %65 = arith.addf %57, %64 : vector<32x8xf32>
    %c8 = arith.constant 8 : index
    %c0_58 = arith.constant 0 : index
    %c0_59 = arith.constant 0 : index
    %66 = vector.load %arg1[%c8, %c0_58, %c0_59] : memref<9x32x128xbf16, #tpu.memory_space<vmem>>, vector<1x32x128xbf16>
    %67 = vector.shape_cast %66 : vector<1x32x128xbf16> to vector<32x128xbf16>
    %cst_60 = arith.constant dense<0.000000e+00> : vector<32x8xf32>
    %68 = tpu.matmul %67, %0, %cst_60 {dimension_numbers = #tpu.dot_dimension_numbers<[1], [0], [0], [1], [0, 0, 1, 1], [], []>} : vector<32x128xbf16>, vector<128x8xbf16>, vector<32x8xf32> -> vector<32x8xf32>
    %69 = arith.truncf %68 : vector<32x8xf32> to vector<32x8xbf16>
    %c8_61 = arith.constant 8 : index
    %c0_62 = arith.constant 0 : index
    %c0_63 = arith.constant 0 : index
    %70 = vector.load %arg2[%c8_61, %c0_62, %c0_63] : memref<9x8x8xbf16, #tpu.memory_space<vmem>>, vector<1x8x8xbf16>
    %71 = vector.shape_cast %70 : vector<1x8x8xbf16> to vector<8x8xbf16>
    %cst_64 = arith.constant dense<0.000000e+00> : vector<32x8xf32>
    %72 = tpu.matmul %69, %71, %cst_64 {dimension_numbers = #tpu.dot_dimension_numbers<[1], [0], [0], [1], [0, 0, 1, 1], [], []>} : vector<32x8xbf16>, vector<8x8xbf16>, vector<32x8xf32> -> vector<32x8xf32>
    %73 = arith.addf %65, %72 : vector<32x8xf32>
    %c0_65 = arith.constant 0 : index
    %c0_66 = arith.constant 0 : index
    %74 = vector.load %arg3[%c0_65, %c0_66] : memref<1x8xf32, #tpu.memory_space<vmem>>, vector<1x8xf32>
    %75 = vector.broadcast %74 : vector<1x8xf32> to vector<32x8xf32>
    %76 = arith.addf %73, %75 : vector<32x8xf32>
    %cst_67 = arith.constant 0.000000e+00 : f32
    %77 = vector.broadcast %cst_67 : f32 to vector<32x8xf32>
    %78 = arith.cmpf oge, %76, %77 : vector<32x8xf32>
    %cst_68 = arith.constant 0.00999999977 : f32
    %79 = vector.broadcast %cst_68 : f32 to vector<32x8xf32>
    %80 = arith.mulf %79, %76 : vector<32x8xf32>
    %81 = arith.select %78, %76, %80 : vector<32x8xi1>, vector<32x8xf32>
    %82 = arith.truncf %81 : vector<32x8xf32> to vector<32x8xbf16>
    %cst_69 = arith.constant 0.000000e+00 : f32
    %83 = vector.broadcast %cst_69 : f32 to vector<8x8xf32>
    %c0_70 = arith.constant 0 : index
    %c0_71 = arith.constant 0 : index
    %c0_72 = arith.constant 0 : index
    %84 = vector.load %arg4[%c0_70, %c0_71, %c0_72] : memref<9x8x32xbf16, #tpu.memory_space<vmem>>, vector<1x8x32xbf16>
    %85 = vector.shape_cast %84 : vector<1x8x32xbf16> to vector<8x32xbf16>
    %cst_73 = arith.constant dense<0.000000e+00> : vector<8x8xf32>
    %86 = tpu.matmul %85, %82, %cst_73 {dimension_numbers = #tpu.dot_dimension_numbers<[1], [0], [0], [1], [0, 0, 1, 1], [], []>} : vector<8x32xbf16>, vector<32x8xbf16>, vector<8x8xf32> -> vector<8x8xf32>
    %87 = arith.truncf %86 : vector<8x8xf32> to vector<8x8xbf16>
    %c0_74 = arith.constant 0 : index
    %c0_75 = arith.constant 0 : index
    %c0_76 = arith.constant 0 : index
    %88 = vector.load %arg5[%c0_74, %c0_75, %c0_76] : memref<9x8x8xbf16, #tpu.memory_space<vmem>>, vector<1x8x8xbf16>
    %89 = vector.shape_cast %88 : vector<1x8x8xbf16> to vector<8x8xbf16>
    %cst_77 = arith.constant dense<0.000000e+00> : vector<8x8xf32>
    %90 = tpu.matmul %87, %89, %cst_77 {dimension_numbers = #tpu.dot_dimension_numbers<[1], [0], [0], [1], [0, 0, 1, 1], [], []>} : vector<8x8xbf16>, vector<8x8xbf16>, vector<8x8xf32> -> vector<8x8xf32>
    %91 = arith.addf %83, %90 : vector<8x8xf32>
    %c1_78 = arith.constant 1 : index
    %c0_79 = arith.constant 0 : index
    %c0_80 = arith.constant 0 : index
    %92 = vector.load %arg4[%c1_78, %c0_79, %c0_80] : memref<9x8x32xbf16, #tpu.memory_space<vmem>>, vector<1x8x32xbf16>
    %93 = vector.shape_cast %92 : vector<1x8x32xbf16> to vector<8x32xbf16>
    %cst_81 = arith.constant dense<0.000000e+00> : vector<8x8xf32>
    %94 = tpu.matmul %93, %82, %cst_81 {dimension_numbers = #tpu.dot_dimension_numbers<[1], [0], [0], [1], [0, 0, 1, 1], [], []>} : vector<8x32xbf16>, vector<32x8xbf16>, vector<8x8xf32> -> vector<8x8xf32>
    %95 = arith.truncf %94 : vector<8x8xf32> to vector<8x8xbf16>
    %c1_82 = arith.constant 1 : index
    %c0_83 = arith.constant 0 : index
    %c0_84 = arith.constant 0 : index
    %96 = vector.load %arg5[%c1_82, %c0_83, %c0_84] : memref<9x8x8xbf16, #tpu.memory_space<vmem>>, vector<1x8x8xbf16>
    %97 = vector.shape_cast %96 : vector<1x8x8xbf16> to vector<8x8xbf16>
    %cst_85 = arith.constant dense<0.000000e+00> : vector<8x8xf32>
    %98 = tpu.matmul %95, %97, %cst_85 {dimension_numbers = #tpu.dot_dimension_numbers<[1], [0], [0], [1], [0, 0, 1, 1], [], []>} : vector<8x8xbf16>, vector<8x8xbf16>, vector<8x8xf32> -> vector<8x8xf32>
    %99 = arith.addf %91, %98 : vector<8x8xf32>
    %c2_86 = arith.constant 2 : index
    %c0_87 = arith.constant 0 : index
    %c0_88 = arith.constant 0 : index
    %100 = vector.load %arg4[%c2_86, %c0_87, %c0_88] : memref<9x8x32xbf16, #tpu.memory_space<vmem>>, vector<1x8x32xbf16>
    %101 = vector.shape_cast %100 : vector<1x8x32xbf16> to vector<8x32xbf16>
    %cst_89 = arith.constant dense<0.000000e+00> : vector<8x8xf32>
    %102 = tpu.matmul %101, %82, %cst_89 {dimension_numbers = #tpu.dot_dimension_numbers<[1], [0], [0], [1], [0, 0, 1, 1], [], []>} : vector<8x32xbf16>, vector<32x8xbf16>, vector<8x8xf32> -> vector<8x8xf32>
    %103 = arith.truncf %102 : vector<8x8xf32> to vector<8x8xbf16>
    %c2_90 = arith.constant 2 : index
    %c0_91 = arith.constant 0 : index
    %c0_92 = arith.constant 0 : index
    %104 = vector.load %arg5[%c2_90, %c0_91, %c0_92] : memref<9x8x8xbf16, #tpu.memory_space<vmem>>, vector<1x8x8xbf16>
    %105 = vector.shape_cast %104 : vector<1x8x8xbf16> to vector<8x8xbf16>
    %cst_93 = arith.constant dense<0.000000e+00> : vector<8x8xf32>
    %106 = tpu.matmul %103, %105, %cst_93 {dimension_numbers = #tpu.dot_dimension_numbers<[1], [0], [0], [1], [0, 0, 1, 1], [], []>} : vector<8x8xbf16>, vector<8x8xbf16>, vector<8x8xf32> -> vector<8x8xf32>
    %107 = arith.addf %99, %106 : vector<8x8xf32>
    %c3_94 = arith.constant 3 : index
    %c0_95 = arith.constant 0 : index
    %c0_96 = arith.constant 0 : index
    %108 = vector.load %arg4[%c3_94, %c0_95, %c0_96] : memref<9x8x32xbf16, #tpu.memory_space<vmem>>, vector<1x8x32xbf16>
    %109 = vector.shape_cast %108 : vector<1x8x32xbf16> to vector<8x32xbf16>
    %cst_97 = arith.constant dense<0.000000e+00> : vector<8x8xf32>
    %110 = tpu.matmul %109, %82, %cst_97 {dimension_numbers = #tpu.dot_dimension_numbers<[1], [0], [0], [1], [0, 0, 1, 1], [], []>} : vector<8x32xbf16>, vector<32x8xbf16>, vector<8x8xf32> -> vector<8x8xf32>
    %111 = arith.truncf %110 : vector<8x8xf32> to vector<8x8xbf16>
    %c3_98 = arith.constant 3 : index
    %c0_99 = arith.constant 0 : index
    %c0_100 = arith.constant 0 : index
    %112 = vector.load %arg5[%c3_98, %c0_99, %c0_100] : memref<9x8x8xbf16, #tpu.memory_space<vmem>>, vector<1x8x8xbf16>
    %113 = vector.shape_cast %112 : vector<1x8x8xbf16> to vector<8x8xbf16>
    %cst_101 = arith.constant dense<0.000000e+00> : vector<8x8xf32>
    %114 = tpu.matmul %111, %113, %cst_101 {dimension_numbers = #tpu.dot_dimension_numbers<[1], [0], [0], [1], [0, 0, 1, 1], [], []>} : vector<8x8xbf16>, vector<8x8xbf16>, vector<8x8xf32> -> vector<8x8xf32>
    %115 = arith.addf %107, %114 : vector<8x8xf32>
    %c4_102 = arith.constant 4 : index
    %c0_103 = arith.constant 0 : index
    %c0_104 = arith.constant 0 : index
    %116 = vector.load %arg4[%c4_102, %c0_103, %c0_104] : memref<9x8x32xbf16, #tpu.memory_space<vmem>>, vector<1x8x32xbf16>
    %117 = vector.shape_cast %116 : vector<1x8x32xbf16> to vector<8x32xbf16>
    %cst_105 = arith.constant dense<0.000000e+00> : vector<8x8xf32>
    %118 = tpu.matmul %117, %82, %cst_105 {dimension_numbers = #tpu.dot_dimension_numbers<[1], [0], [0], [1], [0, 0, 1, 1], [], []>} : vector<8x32xbf16>, vector<32x8xbf16>, vector<8x8xf32> -> vector<8x8xf32>
    %119 = arith.truncf %118 : vector<8x8xf32> to vector<8x8xbf16>
    %c4_106 = arith.constant 4 : index
    %c0_107 = arith.constant 0 : index
    %c0_108 = arith.constant 0 : index
    %120 = vector.load %arg5[%c4_106, %c0_107, %c0_108] : memref<9x8x8xbf16, #tpu.memory_space<vmem>>, vector<1x8x8xbf16>
    %121 = vector.shape_cast %120 : vector<1x8x8xbf16> to vector<8x8xbf16>
    %cst_109 = arith.constant dense<0.000000e+00> : vector<8x8xf32>
    %122 = tpu.matmul %119, %121, %cst_109 {dimension_numbers = #tpu.dot_dimension_numbers<[1], [0], [0], [1], [0, 0, 1, 1], [], []>} : vector<8x8xbf16>, vector<8x8xbf16>, vector<8x8xf32> -> vector<8x8xf32>
    %123 = arith.addf %115, %122 : vector<8x8xf32>
    %c5_110 = arith.constant 5 : index
    %c0_111 = arith.constant 0 : index
    %c0_112 = arith.constant 0 : index
    %124 = vector.load %arg4[%c5_110, %c0_111, %c0_112] : memref<9x8x32xbf16, #tpu.memory_space<vmem>>, vector<1x8x32xbf16>
    %125 = vector.shape_cast %124 : vector<1x8x32xbf16> to vector<8x32xbf16>
    %cst_113 = arith.constant dense<0.000000e+00> : vector<8x8xf32>
    %126 = tpu.matmul %125, %82, %cst_113 {dimension_numbers = #tpu.dot_dimension_numbers<[1], [0], [0], [1], [0, 0, 1, 1], [], []>} : vector<8x32xbf16>, vector<32x8xbf16>, vector<8x8xf32> -> vector<8x8xf32>
    %127 = arith.truncf %126 : vector<8x8xf32> to vector<8x8xbf16>
    %c5_114 = arith.constant 5 : index
    %c0_115 = arith.constant 0 : index
    %c0_116 = arith.constant 0 : index
    %128 = vector.load %arg5[%c5_114, %c0_115, %c0_116] : memref<9x8x8xbf16, #tpu.memory_space<vmem>>, vector<1x8x8xbf16>
    %129 = vector.shape_cast %128 : vector<1x8x8xbf16> to vector<8x8xbf16>
    %cst_117 = arith.constant dense<0.000000e+00> : vector<8x8xf32>
    %130 = tpu.matmul %127, %129, %cst_117 {dimension_numbers = #tpu.dot_dimension_numbers<[1], [0], [0], [1], [0, 0, 1, 1], [], []>} : vector<8x8xbf16>, vector<8x8xbf16>, vector<8x8xf32> -> vector<8x8xf32>
    %131 = arith.addf %123, %130 : vector<8x8xf32>
    %c6_118 = arith.constant 6 : index
    %c0_119 = arith.constant 0 : index
    %c0_120 = arith.constant 0 : index
    %132 = vector.load %arg4[%c6_118, %c0_119, %c0_120] : memref<9x8x32xbf16, #tpu.memory_space<vmem>>, vector<1x8x32xbf16>
    %133 = vector.shape_cast %132 : vector<1x8x32xbf16> to vector<8x32xbf16>
    %cst_121 = arith.constant dense<0.000000e+00> : vector<8x8xf32>
    %134 = tpu.matmul %133, %82, %cst_121 {dimension_numbers = #tpu.dot_dimension_numbers<[1], [0], [0], [1], [0, 0, 1, 1], [], []>} : vector<8x32xbf16>, vector<32x8xbf16>, vector<8x8xf32> -> vector<8x8xf32>
    %135 = arith.truncf %134 : vector<8x8xf32> to vector<8x8xbf16>
    %c6_122 = arith.constant 6 : index
    %c0_123 = arith.constant 0 : index
    %c0_124 = arith.constant 0 : index
    %136 = vector.load %arg5[%c6_122, %c0_123, %c0_124] : memref<9x8x8xbf16, #tpu.memory_space<vmem>>, vector<1x8x8xbf16>
    %137 = vector.shape_cast %136 : vector<1x8x8xbf16> to vector<8x8xbf16>
    %cst_125 = arith.constant dense<0.000000e+00> : vector<8x8xf32>
    %138 = tpu.matmul %135, %137, %cst_125 {dimension_numbers = #tpu.dot_dimension_numbers<[1], [0], [0], [1], [0, 0, 1, 1], [], []>} : vector<8x8xbf16>, vector<8x8xbf16>, vector<8x8xf32> -> vector<8x8xf32>
    %139 = arith.addf %131, %138 : vector<8x8xf32>
    %c7_126 = arith.constant 7 : index
    %c0_127 = arith.constant 0 : index
    %c0_128 = arith.constant 0 : index
    %140 = vector.load %arg4[%c7_126, %c0_127, %c0_128] : memref<9x8x32xbf16, #tpu.memory_space<vmem>>, vector<1x8x32xbf16>
    %141 = vector.shape_cast %140 : vector<1x8x32xbf16> to vector<8x32xbf16>
    %cst_129 = arith.constant dense<0.000000e+00> : vector<8x8xf32>
    %142 = tpu.matmul %141, %82, %cst_129 {dimension_numbers = #tpu.dot_dimension_numbers<[1], [0], [0], [1], [0, 0, 1, 1], [], []>} : vector<8x32xbf16>, vector<32x8xbf16>, vector<8x8xf32> -> vector<8x8xf32>
    %143 = arith.truncf %142 : vector<8x8xf32> to vector<8x8xbf16>
    %c7_130 = arith.constant 7 : index
    %c0_131 = arith.constant 0 : index
    %c0_132 = arith.constant 0 : index
    %144 = vector.load %arg5[%c7_130, %c0_131, %c0_132] : memref<9x8x8xbf16, #tpu.memory_space<vmem>>, vector<1x8x8xbf16>
    %145 = vector.shape_cast %144 : vector<1x8x8xbf16> to vector<8x8xbf16>
    %cst_133 = arith.constant dense<0.000000e+00> : vector<8x8xf32>
    %146 = tpu.matmul %143, %145, %cst_133 {dimension_numbers = #tpu.dot_dimension_numbers<[1], [0], [0], [1], [0, 0, 1, 1], [], []>} : vector<8x8xbf16>, vector<8x8xbf16>, vector<8x8xf32> -> vector<8x8xf32>
    %147 = arith.addf %139, %146 : vector<8x8xf32>
    %c8_134 = arith.constant 8 : index
    %c0_135 = arith.constant 0 : index
    %c0_136 = arith.constant 0 : index
    %148 = vector.load %arg4[%c8_134, %c0_135, %c0_136] : memref<9x8x32xbf16, #tpu.memory_space<vmem>>, vector<1x8x32xbf16>
    %149 = vector.shape_cast %148 : vector<1x8x32xbf16> to vector<8x32xbf16>
    %cst_137 = arith.constant dense<0.000000e+00> : vector<8x8xf32>
    %150 = tpu.matmul %149, %82, %cst_137 {dimension_numbers = #tpu.dot_dimension_numbers<[1], [0], [0], [1], [0, 0, 1, 1], [], []>} : vector<8x32xbf16>, vector<32x8xbf16>, vector<8x8xf32> -> vector<8x8xf32>
    %151 = arith.truncf %150 : vector<8x8xf32> to vector<8x8xbf16>
    %c8_138 = arith.constant 8 : index
    %c0_139 = arith.constant 0 : index
    %c0_140 = arith.constant 0 : index
    %152 = vector.load %arg5[%c8_138, %c0_139, %c0_140] : memref<9x8x8xbf16, #tpu.memory_space<vmem>>, vector<1x8x8xbf16>
    %153 = vector.shape_cast %152 : vector<1x8x8xbf16> to vector<8x8xbf16>
    %cst_141 = arith.constant dense<0.000000e+00> : vector<8x8xf32>
    %154 = tpu.matmul %151, %153, %cst_141 {dimension_numbers = #tpu.dot_dimension_numbers<[1], [0], [0], [1], [0, 0, 1, 1], [], []>} : vector<8x8xbf16>, vector<8x8xbf16>, vector<8x8xf32> -> vector<8x8xf32>
    %155 = arith.addf %147, %154 : vector<8x8xf32>
    %c0_142 = arith.constant 0 : index
    %c0_143 = arith.constant 0 : index
    %156 = vector.load %arg6[%c0_142, %c0_143] : memref<1x8xf32, #tpu.memory_space<vmem>>, vector<1x8xf32>
    %157 = vector.broadcast %156 : vector<1x8xf32> to vector<8x8xf32>
    %158 = arith.addf %155, %157 : vector<8x8xf32>
    %cst_144 = arith.constant 0.000000e+00 : f32
    %159 = vector.broadcast %cst_144 : f32 to vector<8x8xf32>
    %160 = arith.cmpf oge, %158, %159 : vector<8x8xf32>
    %cst_145 = arith.constant 0.00999999977 : f32
    %161 = vector.broadcast %cst_145 : f32 to vector<8x8xf32>
    %162 = arith.mulf %161, %158 : vector<8x8xf32>
    %163 = arith.select %160, %158, %162 : vector<8x8xi1>, vector<8x8xf32>
    %164 = arith.truncf %163 : vector<8x8xf32> to vector<8x8xbf16>
    %cst_146 = arith.constant 0.000000e+00 : f32
    %165 = vector.broadcast %cst_146 : f32 to vector<2x8xf32>
    %c0_147 = arith.constant 0 : index
    %c0_148 = arith.constant 0 : index
    %c0_149 = arith.constant 0 : index
    %166 = vector.load %arg7[%c0_147, %c0_148, %c0_149] : memref<9x2x8xbf16, #tpu.memory_space<vmem>>, vector<1x2x8xbf16>
    %167 = vector.shape_cast %166 : vector<1x2x8xbf16> to vector<2x8xbf16>
    %cst_150 = arith.constant dense<0.000000e+00> : vector<2x8xf32>
    %168 = tpu.matmul %167, %164, %cst_150 {dimension_numbers = #tpu.dot_dimension_numbers<[1], [0], [0], [1], [0, 0, 1, 1], [], []>} : vector<2x8xbf16>, vector<8x8xbf16>, vector<2x8xf32> -> vector<2x8xf32>
    %169 = arith.truncf %168 : vector<2x8xf32> to vector<2x8xbf16>
    %c0_151 = arith.constant 0 : index
    %c0_152 = arith.constant 0 : index
    %c0_153 = arith.constant 0 : index
    %170 = vector.load %arg8[%c0_151, %c0_152, %c0_153] : memref<9x8x8xbf16, #tpu.memory_space<vmem>>, vector<1x8x8xbf16>
    %171 = vector.shape_cast %170 : vector<1x8x8xbf16> to vector<8x8xbf16>
    %cst_154 = arith.constant dense<0.000000e+00> : vector<2x8xf32>
    %172 = tpu.matmul %169, %171, %cst_154 {dimension_numbers = #tpu.dot_dimension_numbers<[1], [0], [0], [1], [0, 0, 1, 1], [], []>} : vector<2x8xbf16>, vector<8x8xbf16>, vector<2x8xf32> -> vector<2x8xf32>
    %173 = arith.addf %165, %172 : vector<2x8xf32>
    %c1_155 = arith.constant 1 : index
    %c0_156 = arith.constant 0 : index
    %c0_157 = arith.constant 0 : index
    %174 = vector.load %arg7[%c1_155, %c0_156, %c0_157] : memref<9x2x8xbf16, #tpu.memory_space<vmem>>, vector<1x2x8xbf16>
    %175 = vector.shape_cast %174 : vector<1x2x8xbf16> to vector<2x8xbf16>
    %cst_158 = arith.constant dense<0.000000e+00> : vector<2x8xf32>
    %176 = tpu.matmul %175, %164, %cst_158 {dimension_numbers = #tpu.dot_dimension_numbers<[1], [0], [0], [1], [0, 0, 1, 1], [], []>} : vector<2x8xbf16>, vector<8x8xbf16>, vector<2x8xf32> -> vector<2x8xf32>
    %177 = arith.truncf %176 : vector<2x8xf32> to vector<2x8xbf16>
    %c1_159 = arith.constant 1 : index
    %c0_160 = arith.constant 0 : index
    %c0_161 = arith.constant 0 : index
    %178 = vector.load %arg8[%c1_159, %c0_160, %c0_161] : memref<9x8x8xbf16, #tpu.memory_space<vmem>>, vector<1x8x8xbf16>
    %179 = vector.shape_cast %178 : vector<1x8x8xbf16> to vector<8x8xbf16>
    %cst_162 = arith.constant dense<0.000000e+00> : vector<2x8xf32>
    %180 = tpu.matmul %177, %179, %cst_162 {dimension_numbers = #tpu.dot_dimension_numbers<[1], [0], [0], [1], [0, 0, 1, 1], [], []>} : vector<2x8xbf16>, vector<8x8xbf16>, vector<2x8xf32> -> vector<2x8xf32>
    %181 = arith.addf %173, %180 : vector<2x8xf32>
    %c2_163 = arith.constant 2 : index
    %c0_164 = arith.constant 0 : index
    %c0_165 = arith.constant 0 : index
    %182 = vector.load %arg7[%c2_163, %c0_164, %c0_165] : memref<9x2x8xbf16, #tpu.memory_space<vmem>>, vector<1x2x8xbf16>
    %183 = vector.shape_cast %182 : vector<1x2x8xbf16> to vector<2x8xbf16>
    %cst_166 = arith.constant dense<0.000000e+00> : vector<2x8xf32>
    %184 = tpu.matmul %183, %164, %cst_166 {dimension_numbers = #tpu.dot_dimension_numbers<[1], [0], [0], [1], [0, 0, 1, 1], [], []>} : vector<2x8xbf16>, vector<8x8xbf16>, vector<2x8xf32> -> vector<2x8xf32>
    %185 = arith.truncf %184 : vector<2x8xf32> to vector<2x8xbf16>
    %c2_167 = arith.constant 2 : index
    %c0_168 = arith.constant 0 : index
    %c0_169 = arith.constant 0 : index
    %186 = vector.load %arg8[%c2_167, %c0_168, %c0_169] : memref<9x8x8xbf16, #tpu.memory_space<vmem>>, vector<1x8x8xbf16>
    %187 = vector.shape_cast %186 : vector<1x8x8xbf16> to vector<8x8xbf16>
    %cst_170 = arith.constant dense<0.000000e+00> : vector<2x8xf32>
    %188 = tpu.matmul %185, %187, %cst_170 {dimension_numbers = #tpu.dot_dimension_numbers<[1], [0], [0], [1], [0, 0, 1, 1], [], []>} : vector<2x8xbf16>, vector<8x8xbf16>, vector<2x8xf32> -> vector<2x8xf32>
    %189 = arith.addf %181, %188 : vector<2x8xf32>
    %c3_171 = arith.constant 3 : index
    %c0_172 = arith.constant 0 : index
    %c0_173 = arith.constant 0 : index
    %190 = vector.load %arg7[%c3_171, %c0_172, %c0_173] : memref<9x2x8xbf16, #tpu.memory_space<vmem>>, vector<1x2x8xbf16>
    %191 = vector.shape_cast %190 : vector<1x2x8xbf16> to vector<2x8xbf16>
    %cst_174 = arith.constant dense<0.000000e+00> : vector<2x8xf32>
    %192 = tpu.matmul %191, %164, %cst_174 {dimension_numbers = #tpu.dot_dimension_numbers<[1], [0], [0], [1], [0, 0, 1, 1], [], []>} : vector<2x8xbf16>, vector<8x8xbf16>, vector<2x8xf32> -> vector<2x8xf32>
    %193 = arith.truncf %192 : vector<2x8xf32> to vector<2x8xbf16>
    %c3_175 = arith.constant 3 : index
    %c0_176 = arith.constant 0 : index
    %c0_177 = arith.constant 0 : index
    %194 = vector.load %arg8[%c3_175, %c0_176, %c0_177] : memref<9x8x8xbf16, #tpu.memory_space<vmem>>, vector<1x8x8xbf16>
    %195 = vector.shape_cast %194 : vector<1x8x8xbf16> to vector<8x8xbf16>
    %cst_178 = arith.constant dense<0.000000e+00> : vector<2x8xf32>
    %196 = tpu.matmul %193, %195, %cst_178 {dimension_numbers = #tpu.dot_dimension_numbers<[1], [0], [0], [1], [0, 0, 1, 1], [], []>} : vector<2x8xbf16>, vector<8x8xbf16>, vector<2x8xf32> -> vector<2x8xf32>
    %197 = arith.addf %189, %196 : vector<2x8xf32>
    %c4_179 = arith.constant 4 : index
    %c0_180 = arith.constant 0 : index
    %c0_181 = arith.constant 0 : index
    %198 = vector.load %arg7[%c4_179, %c0_180, %c0_181] : memref<9x2x8xbf16, #tpu.memory_space<vmem>>, vector<1x2x8xbf16>
    %199 = vector.shape_cast %198 : vector<1x2x8xbf16> to vector<2x8xbf16>
    %cst_182 = arith.constant dense<0.000000e+00> : vector<2x8xf32>
    %200 = tpu.matmul %199, %164, %cst_182 {dimension_numbers = #tpu.dot_dimension_numbers<[1], [0], [0], [1], [0, 0, 1, 1], [], []>} : vector<2x8xbf16>, vector<8x8xbf16>, vector<2x8xf32> -> vector<2x8xf32>
    %201 = arith.truncf %200 : vector<2x8xf32> to vector<2x8xbf16>
    %c4_183 = arith.constant 4 : index
    %c0_184 = arith.constant 0 : index
    %c0_185 = arith.constant 0 : index
    %202 = vector.load %arg8[%c4_183, %c0_184, %c0_185] : memref<9x8x8xbf16, #tpu.memory_space<vmem>>, vector<1x8x8xbf16>
    %203 = vector.shape_cast %202 : vector<1x8x8xbf16> to vector<8x8xbf16>
    %cst_186 = arith.constant dense<0.000000e+00> : vector<2x8xf32>
    %204 = tpu.matmul %201, %203, %cst_186 {dimension_numbers = #tpu.dot_dimension_numbers<[1], [0], [0], [1], [0, 0, 1, 1], [], []>} : vector<2x8xbf16>, vector<8x8xbf16>, vector<2x8xf32> -> vector<2x8xf32>
    %205 = arith.addf %197, %204 : vector<2x8xf32>
    %c5_187 = arith.constant 5 : index
    %c0_188 = arith.constant 0 : index
    %c0_189 = arith.constant 0 : index
    %206 = vector.load %arg7[%c5_187, %c0_188, %c0_189] : memref<9x2x8xbf16, #tpu.memory_space<vmem>>, vector<1x2x8xbf16>
    %207 = vector.shape_cast %206 : vector<1x2x8xbf16> to vector<2x8xbf16>
    %cst_190 = arith.constant dense<0.000000e+00> : vector<2x8xf32>
    %208 = tpu.matmul %207, %164, %cst_190 {dimension_numbers = #tpu.dot_dimension_numbers<[1], [0], [0], [1], [0, 0, 1, 1], [], []>} : vector<2x8xbf16>, vector<8x8xbf16>, vector<2x8xf32> -> vector<2x8xf32>
    %209 = arith.truncf %208 : vector<2x8xf32> to vector<2x8xbf16>
    %c5_191 = arith.constant 5 : index
    %c0_192 = arith.constant 0 : index
    %c0_193 = arith.constant 0 : index
    %210 = vector.load %arg8[%c5_191, %c0_192, %c0_193] : memref<9x8x8xbf16, #tpu.memory_space<vmem>>, vector<1x8x8xbf16>
    %211 = vector.shape_cast %210 : vector<1x8x8xbf16> to vector<8x8xbf16>
    %cst_194 = arith.constant dense<0.000000e+00> : vector<2x8xf32>
    %212 = tpu.matmul %209, %211, %cst_194 {dimension_numbers = #tpu.dot_dimension_numbers<[1], [0], [0], [1], [0, 0, 1, 1], [], []>} : vector<2x8xbf16>, vector<8x8xbf16>, vector<2x8xf32> -> vector<2x8xf32>
    %213 = arith.addf %205, %212 : vector<2x8xf32>
    %c6_195 = arith.constant 6 : index
    %c0_196 = arith.constant 0 : index
    %c0_197 = arith.constant 0 : index
    %214 = vector.load %arg7[%c6_195, %c0_196, %c0_197] : memref<9x2x8xbf16, #tpu.memory_space<vmem>>, vector<1x2x8xbf16>
    %215 = vector.shape_cast %214 : vector<1x2x8xbf16> to vector<2x8xbf16>
    %cst_198 = arith.constant dense<0.000000e+00> : vector<2x8xf32>
    %216 = tpu.matmul %215, %164, %cst_198 {dimension_numbers = #tpu.dot_dimension_numbers<[1], [0], [0], [1], [0, 0, 1, 1], [], []>} : vector<2x8xbf16>, vector<8x8xbf16>, vector<2x8xf32> -> vector<2x8xf32>
    %217 = arith.truncf %216 : vector<2x8xf32> to vector<2x8xbf16>
    %c6_199 = arith.constant 6 : index
    %c0_200 = arith.constant 0 : index
    %c0_201 = arith.constant 0 : index
    %218 = vector.load %arg8[%c6_199, %c0_200, %c0_201] : memref<9x8x8xbf16, #tpu.memory_space<vmem>>, vector<1x8x8xbf16>
    %219 = vector.shape_cast %218 : vector<1x8x8xbf16> to vector<8x8xbf16>
    %cst_202 = arith.constant dense<0.000000e+00> : vector<2x8xf32>
    %220 = tpu.matmul %217, %219, %cst_202 {dimension_numbers = #tpu.dot_dimension_numbers<[1], [0], [0], [1], [0, 0, 1, 1], [], []>} : vector<2x8xbf16>, vector<8x8xbf16>, vector<2x8xf32> -> vector<2x8xf32>
    %221 = arith.addf %213, %220 : vector<2x8xf32>
    %c7_203 = arith.constant 7 : index
    %c0_204 = arith.constant 0 : index
    %c0_205 = arith.constant 0 : index
    %222 = vector.load %arg7[%c7_203, %c0_204, %c0_205] : memref<9x2x8xbf16, #tpu.memory_space<vmem>>, vector<1x2x8xbf16>
    %223 = vector.shape_cast %222 : vector<1x2x8xbf16> to vector<2x8xbf16>
    %cst_206 = arith.constant dense<0.000000e+00> : vector<2x8xf32>
    %224 = tpu.matmul %223, %164, %cst_206 {dimension_numbers = #tpu.dot_dimension_numbers<[1], [0], [0], [1], [0, 0, 1, 1], [], []>} : vector<2x8xbf16>, vector<8x8xbf16>, vector<2x8xf32> -> vector<2x8xf32>
    %225 = arith.truncf %224 : vector<2x8xf32> to vector<2x8xbf16>
    %c7_207 = arith.constant 7 : index
    %c0_208 = arith.constant 0 : index
    %c0_209 = arith.constant 0 : index
    %226 = vector.load %arg8[%c7_207, %c0_208, %c0_209] : memref<9x8x8xbf16, #tpu.memory_space<vmem>>, vector<1x8x8xbf16>
    %227 = vector.shape_cast %226 : vector<1x8x8xbf16> to vector<8x8xbf16>
    %cst_210 = arith.constant dense<0.000000e+00> : vector<2x8xf32>
    %228 = tpu.matmul %225, %227, %cst_210 {dimension_numbers = #tpu.dot_dimension_numbers<[1], [0], [0], [1], [0, 0, 1, 1], [], []>} : vector<2x8xbf16>, vector<8x8xbf16>, vector<2x8xf32> -> vector<2x8xf32>
    %229 = arith.addf %221, %228 : vector<2x8xf32>
    %c8_211 = arith.constant 8 : index
    %c0_212 = arith.constant 0 : index
    %c0_213 = arith.constant 0 : index
    %230 = vector.load %arg7[%c8_211, %c0_212, %c0_213] : memref<9x2x8xbf16, #tpu.memory_space<vmem>>, vector<1x2x8xbf16>
    %231 = vector.shape_cast %230 : vector<1x2x8xbf16> to vector<2x8xbf16>
    %cst_214 = arith.constant dense<0.000000e+00> : vector<2x8xf32>
    %232 = tpu.matmul %231, %164, %cst_214 {dimension_numbers = #tpu.dot_dimension_numbers<[1], [0], [0], [1], [0, 0, 1, 1], [], []>} : vector<2x8xbf16>, vector<8x8xbf16>, vector<2x8xf32> -> vector<2x8xf32>
    %233 = arith.truncf %232 : vector<2x8xf32> to vector<2x8xbf16>
    %c8_215 = arith.constant 8 : index
    %c0_216 = arith.constant 0 : index
    %c0_217 = arith.constant 0 : index
    %234 = vector.load %arg8[%c8_215, %c0_216, %c0_217] : memref<9x8x8xbf16, #tpu.memory_space<vmem>>, vector<1x8x8xbf16>
    %235 = vector.shape_cast %234 : vector<1x8x8xbf16> to vector<8x8xbf16>
    %cst_218 = arith.constant dense<0.000000e+00> : vector<2x8xf32>
    %236 = tpu.matmul %233, %235, %cst_218 {dimension_numbers = #tpu.dot_dimension_numbers<[1], [0], [0], [1], [0, 0, 1, 1], [], []>} : vector<2x8xbf16>, vector<8x8xbf16>, vector<2x8xf32> -> vector<2x8xf32>
    %237 = arith.addf %229, %236 : vector<2x8xf32>
    %c0_219 = arith.constant 0 : index
    %c0_220 = arith.constant 0 : index
    %238 = vector.load %arg9[%c0_219, %c0_220] : memref<1x8xf32, #tpu.memory_space<vmem>>, vector<1x8xf32>
    %239 = vector.broadcast %238 : vector<1x8xf32> to vector<2x8xf32>
    %240 = arith.addf %237, %239 : vector<2x8xf32>
    %cst_221 = arith.constant 0.000000e+00 : f32
    %241 = vector.broadcast %cst_221 : f32 to vector<2x8xf32>
    %242 = arith.cmpf oge, %240, %241 : vector<2x8xf32>
    %cst_222 = arith.constant 0.00999999977 : f32
    %243 = vector.broadcast %cst_222 : f32 to vector<2x8xf32>
    %244 = arith.mulf %243, %240 : vector<2x8xf32>
    %245 = arith.select %242, %240, %244 : vector<2x8xi1>, vector<2x8xf32>
    %246 = arith.truncf %245 : vector<2x8xf32> to vector<2x8xbf16>
    %c0_223 = arith.constant 0 : index
    %c0_224 = arith.constant 0 : index
    %247 = vector.load %arg10[%c0_223, %c0_224] : memref<8x8xbf16, #tpu.memory_space<vmem>>, vector<8x8xbf16>
    %cst_225 = arith.constant dense<0.000000e+00> : vector<2x8xf32>
    %248 = tpu.matmul %246, %247, %cst_225 {dimension_numbers = #tpu.dot_dimension_numbers<[1], [0], [0], [1], [0, 0, 1, 1], [], []>} : vector<2x8xbf16>, vector<8x8xbf16>, vector<2x8xf32> -> vector<2x8xf32>
    %c0_226 = arith.constant 0 : index
    %c0_227 = arith.constant 0 : index
    %249 = vector.load %arg11[%c0_226, %c0_227] : memref<1x8xf32, #tpu.memory_space<vmem>>, vector<1x8xf32>
    %250 = vector.broadcast %249 : vector<1x8xf32> to vector<2x8xf32>
    %251 = arith.addf %248, %250 : vector<2x8xf32>
    %c0_228 = arith.constant 0 : index
    %c0_229 = arith.constant 0 : index
    %252 = vector.load %arg12[%c0_228, %c0_229] : memref<2x8xf32, #tpu.memory_space<vmem>>, vector<2x8xf32>
    tpu.vector_store %arg12[%c0_228, %c0_229], %251 {strides = array<i32>} : memref<2x8xf32, #tpu.memory_space<vmem>>, vector<2x8xf32>,
    return
  }
}

</mosaic_0001>

<bundles_post_ra>
// kernel: to_style_forward.2
= control target key start
LH: loop header
LB: loop body
LE: loop exit
PB: predicated region body
PF: predicated region fallthrough
CT: control target
= control target key end

     0   :  { %s972_s12 = smov 0   ;;  %s974_s13 = smov 0   ;;  %s1068_s0 = inlined_call_operand.vmem [shape: bf16[2,144,12], index: 0, kind: input, shape index: {}]   ;;  %s1069_s1 = inlined_call_operand.vmem [shape: bf16[3,12,8], index: 1, kind: input, shape index: {}]   ;;  %s1070_s2 = inlined_call_operand.vmem [shape: f32[1,8], index: 2, kind: input, shape index: {}]   ;;  %s1071_s3 = inlined_call_operand.vmem [shape: bf16[2,64,8], index: 3, kind: output, shape index: {}]  }
   0x1   :  { %s976_s14 = smov 0  }
   0x2 LB: > { %s25_s15 = sadd.s32 1, %s946_s13  ;;  %p767_p0 = scmp.ge.s32.totalorder %s950_s14, 1  ;;  %s950_s14 = sphi %s976_s14, %s13_s14   ;;  %s946_s13 = sphi %s974_s13, %s1073_s13   ;;  %s942_s12 = sphi %s972_s12, %s1072_s12  }
   0x3   : > { %p27_p1 = scmp.ge.s32.totalorder %s25_s15, 2  ;;  %p131_p2 = scmp.lt.s32.totalorder %s950_s14, 3 }
   0x5   : > { %s1075_s15 = smov (%p27_p1, %s25_s15), 0  ;;  %p132_p3 = pnand %p767_p0, %p131_p2 }
   0x6   : > { %p159_p4 = scmp.lt.s32.totalorder (!%p132_p3), %s942_s12, 1  ;;  %v212_v0 = vld [vmem:[%s1069_s1] sm:$0xff] (!%p132_p3)  ;;  %v214_v1 = vld [vmem:[%s1069_s1 + $0x8] sm:$0xff] (!%p132_p3)  ;;  %v216_v2 = vld [vmem:[%s1069_s1 + $0x10] sm:$0xff] (!%p132_p3) }
   0x7   : > { %135 = sbr.rel (%p132_p3) target bundleno = 271 (0x10f), region = 28  ;;  %213 = vst [vmem:[#allocation2] sm:$0xff] (!%p132_p3), %v212_v0  ;;  %215 = vst [vmem:[#allocation2 + $0x8] sm:$0xff] (!%p132_p3), %v214_v1 }
   0x8   : > { %217 = vst [vmem:[#allocation2 + $0x10] sm:$0xff] (!%p132_p3), %v216_v2 }
   0xe   : > { %s1077_s12 = smov (!%p159_p4, %s942_s12), 1 }
   0xf   : > { %s886_s22 = smul.u32 72, %s1077_s12  ;;  %s810_s23 = sshll.u32 %s1077_s12, 5 }
  0x10   : > { %s1002_s26 = scalar_lea.vmem %s1071_s3, %s810_s23 }
  0x11   : > { %s1007_s29 = scalar_lea.vmem %s1068_s0, %s886_s22 }
  0x12   : > { %225 = vsyncadd [#allocation3], 384 }
  0x13   : > { %938 = dma.done.wait [#allocation3], 384 }
  0x14   : > { %939 = vsyncadd [#allocation3], 4294966912  ;;  %vm290_vm0 = vcmask 1045504   ;;  %vm277_vm1 = vcmask 97280   ;;  %v911_v3 = vld [vmem:[#allocation2 + $0x8] sm:$0x3f]  }
  0x15   : > { %v912_v4 = vld [vmem:[#allocation2] sm:$0x3f]   ;;  %882 = vmatprep.subr.msk.bf16.mxu1 %vm290_vm0, %v911_v3  ;;  %v292_v5 = vsel %vm290_vm0, %v911_v3, 0  ;;  %v913_v6 = vld [vmem:[%s1007_s29 + $0x28] sm:$0xff]   ;;  %v915_v9 = vld [vmem:[%s1007_s29 + $0x30] sm:$0xff]   ;;  %vm659_vm4 = vcmask 60416  }
  0x16   : > { %883 = vmatprep.subr.msk.bf16.mxu0 %vm290_vm0, %v912_v4  ;;  %835 = vmatpush3.bf16.msra.mxu1 %v292_v5  ;;  %v397_v7 = vsel %vm290_vm0, %v912_v4, 0  ;;  %v914_v8 = vld [vmem:[%s1007_s29] sm:$0xff]   ;;  %v916_v10 = vld [vmem:[%s1007_s29 + $0x8] sm:$0xff]   ;;  %v917_v11 = vld [vmem:[#allocation2 + $0x10] sm:$0x3f]  }
  0x17   : > { %845 = vmatpush3.bf16.msra.mxu0 %v397_v7  ;;  %836 = vmatprep.mubr.msk.bf16.mxu1 %vm277_vm1, %v913_v6  ;;  %v918_v12 = vld [vmem:[%s1007_s29 + $0x38] sm:$0xff]   ;;  %v513_v13 = vsel %vm290_vm0, %v917_v11, 0  ;;  %v920_v14 = vld [vmem:[%s1007_s29 + $0x4] sm:$0xff]   ;;  %v922_v16 = vld [vmem:[%s1007_s29 + $0x10] sm:$0xff]  }
  0x18   : > { %846 = vmatprep.mubr.msk.bf16.mxu0 %vm277_vm1, %v914_v8  ;;  %884 = vmatprep.subr.msk.bf16.mxu1 %vm290_vm0, %v912_v4  ;;  %v919_v15 = vld [vmem:[%s1007_s29 + $0x40] sm:$0xff]   ;;  %v921_v17 = vld [vmem:[%s1007_s29 + $0xc] sm:$0xff]   ;;  %v923_v18 = vld [vmem:[%s1007_s29 + $0x14] sm:$0xff]  }
  0x19   : > { %837 = vmatmul.mubr.msk.bf16.vlgmr.msra.gmra.mrb[0].mxu1 %vm277_vm1, %v915_v9  ;;  %885 = vmatprep.subr.msk.bf16.mxu0 %vm290_vm0, %v917_v11  ;;  %v924_v19 = vld [vmem:[%s1007_s29 + $0x18] sm:$0xff]   ;;  %v798_v26 = vld [vmem:[%s1070_s2] ss:$0 sm:$0xff] }
  0x1a   : > { %847 = vmatmul.mubr.msk.bf16.vlgmr.msra.gmra.mrb[0].mxu0 %vm277_vm1, %v916_v10  ;;  %865 = vmatpush3.bf16.msra.mxu1 %v397_v7  ;;  %v925_v20 = vld [vmem:[%s1007_s29 + $0x1c] sm:$0xff]  }
  0x1b   : > { %855 = vmatpush3.bf16.msra.mxu0 %v513_v13  ;;  %840 = vmatprep.mubr.msk.bf16.mxu1 %vm277_vm1, %v918_v12 }
  0x1c   : > { %856 = vmatprep.mubr.msk.bf16.mxu0 %vm277_vm1, %v920_v14 }
  0x21   : > { %841 = vmatmul.mubr.msk.bf16.gmra.mrb[4].mxu1 %vm277_vm1, %v919_v15 }
  0x22   : > { %850 = vmatprep.mubr.msk.bf16.mxu1 %vm277_vm1, %v922_v16 }
  0x26   : > { %857 = vmatmul.mubr.msk.bf16.vlgmr.msra.gmra.mrb[0].mxu0 %vm277_vm1, %v921_v17 }
  0x27   : > { %860 = vmatprep.mubr.msk.bf16.mxu0 %vm277_vm1, %v923_v18 }
  0x2d   : > { %851 = vmatmul.mubr.msk.bf16.vlgmr.msra.gmra.mrb[4].mxu1 %vm277_vm1, %v924_v19 }
  0x2e   : > { %861 = vmatmul.mubr.msk.bf16.gmra.mrb[4].mxu0 %vm277_vm1, %v925_v20 }
  0xec   : > { %v838_v21 = vpop.f32.mrb[0].mxu1 }
  0xed   : > { %v328_v22 = vpop.f32.mrb[1].mxu1 }
  0xee   : > { %v839_v23 = vpop.f32.mrb[2].mxu1 }
  0xef   : > { %v331_v24 = vpop.f32.mrb[3].mxu1 }
  0xf9   : > { %v858_v25 = vpop.f32.mrb[0].mxu0 }
  0xfa   : > { %v866_v27 = vadd.f32 %v858_v25, %v838_v21  ;;  %v549_v28 = vpop.f32.mrb[1].mxu0 }
  0xfb   : > { %v867_v29 = vadd.f32 %v549_v28, %v328_v22  ;;  %v859_v30 = vpop.f32.mrb[2].mxu0 }
  0xfc   : > { %v597_v31 = vadd.f32 %v866_v27, %v798_v26  ;;  %v868_v32 = vadd.f32 %v859_v30, %v839_v23  ;;  %v552_v33 = vpop.f32.mrb[3].mxu0 }
  0xfd   : > { %v595_v34 = vadd.f32 %v867_v29, %v798_v26  ;;  %v869_v35 = vadd.f32 %v552_v33, %v331_v24 }
  0xfe   : > { %vm605_vm2 = vcmp.ge.f32.partialorder %v597_v31, 0.0  ;;  %v613_v36 = vmul.f32 0.01, %v597_v31  ;;  %v598_v37 = vadd.f32 %v868_v32, %v798_v26 }
  0xff   : > { %vm603_vm3 = vcmp.ge.f32.partialorder %v595_v34, 0.0  ;;  %v611_v38 = vmul.f32 0.01, %v595_v34  ;;  %v596_v39 = vadd.f32 %v869_v35, %v798_v26 }
 0x100   : > { %v621_v40 = vsel %vm605_vm2, %v597_v31, %v613_v36  ;;  %vm606_vm5 = vcmp.ge.f32.partialorder %v598_v37, 0.0  ;;  %v614_v41 = vmul.f32 0.01, %v598_v37  ;;  %v852_v42 = vpop.f32.mrb[4].mxu1 }
 0x101   : > { %v813_v43 = vpack.c.bf16 %v621_v40, %v621_v40  ;;  %v619_v44 = vsel %vm603_vm3, %v595_v34, %v611_v38  ;;  %vm604_vm6 = vcmp.ge.f32.partialorder %v596_v39, 0.0  ;;  %v612_v45 = vmul.f32 0.01, %v596_v39  ;;  %v862_v46 = vpop.f32.mrb[4].mxu0  ;;  %v449_v47 = vpop.f32.mrb[5].mxu1 }
 0x102   : > { %v811_v48 = vpack.c.bf16 %v619_v44, %v619_v44  ;;  %v622_v49 = vsel %vm606_vm5, %v598_v37, %v614_v41  ;;  %v870_v50 = vadd.f32 %v862_v46, %v852_v42  ;;  %v565_v51 = vpop.f32.mrb[5].mxu0  ;;  %v853_v52 = vpop.f32.mrb[6].mxu1 }
 0x103   : > { %662 = vst.msk [vmem:[%s1002_s26 + $0x8] sm:$0xf] %vm659_vm4, %v813_v43  ;;  %v814_v53 = vpack.c.bf16 %v622_v49, %v622_v49  ;;  %v620_v54 = vsel %vm604_vm6, %v596_v39, %v612_v45  ;;  %v871_v55 = vadd.f32 %v565_v51, %v449_v47  ;;  %v863_v56 = vpop.f32.mrb[6].mxu0  ;;  %v452_v57 = vpop.f32.mrb[7].mxu1 }
 0x104   : > { %660 = vst.msk [vmem:[%s1002_s26] sm:$0xf] %vm659_vm4, %v811_v48  ;;  %v812_v58 = vpack.c.bf16 %v620_v54, %v620_v54  ;;  %v601_v59 = vadd.f32 %v870_v50, %v798_v26  ;;  %v872_v60 = vadd.f32 %v863_v56, %v853_v52  ;;  %v568_v61 = vpop.f32.mrb[7].mxu0 }
 0x105   : > { %663 = vst.msk [vmem:[%s1002_s26 + $0xc] sm:$0xf] %vm659_vm4, %v814_v53  ;;  %v599_v62 = vadd.f32 %v871_v55, %v798_v26  ;;  %v873_v63 = vadd.f32 %v568_v61, %v452_v57 }
 0x106   : > { %661 = vst.msk [vmem:[%s1002_s26 + $0x4] sm:$0xf] %vm659_vm4, %v812_v58  ;;  %vm609_vm7 = vcmp.ge.f32.partialorder %v601_v59, 0.0  ;;  %v617_v0 = vmul.f32 0.01, %v601_v59  ;;  %v602_v1 = vadd.f32 %v872_v60, %v798_v26 }
 0x107   : > { %vm607_vm8 = vcmp.ge.f32.partialorder %v599_v62, 0.0  ;;  %v615_v2 = vmul.f32 0.01, %v599_v62  ;;  %v600_v3 = vadd.f32 %v873_v63, %v798_v26 }
 0x108   : > { %v625_v4 = vsel %vm609_vm7, %v601_v59, %v617_v0  ;;  %vm610_vm9 = vcmp.ge.f32.partialorder %v602_v1, 0.0  ;;  %v618_v5 = vmul.f32 0.01, %v602_v1 }
 0x109   : > { %v817_v6 = vpack.c.bf16 %v625_v4, %v625_v4  ;;  %v623_v7 = vsel %vm607_vm8, %v599_v62, %v615_v2  ;;  %vm608_vm10 = vcmp.ge.f32.partialorder %v600_v3, 0.0  ;;  %v616_v8 = vmul.f32 0.01, %v600_v3 }
 0x10a   : > { %v815_v9 = vpack.c.bf16 %v623_v7, %v623_v7  ;;  %v626_v10 = vsel %vm610_vm9, %v602_v1, %v618_v5 }
 0x10b   : > { %666 = vst.msk [vmem:[%s1002_s26 + $0x18] sm:$0xf] %vm659_vm4, %v817_v6  ;;  %v818_v11 = vpack.c.bf16 %v626_v10, %v626_v10  ;;  %v624_v12 = vsel %vm608_vm10, %v600_v3, %v616_v8 }
 0x10c   : > { %664 = vst.msk [vmem:[%s1002_s26 + $0x10] sm:$0xf] %vm659_vm4, %v815_v9  ;;  %v816_v13 = vpack.c.bf16 %v624_v12, %v624_v12 }
 0x10d   : > { %667 = vst.msk [vmem:[%s1002_s26 + $0x1c] sm:$0xf] %vm659_vm4, %v818_v11 }
 0x10e   : > { %665 = vst.msk [vmem:[%s1002_s26 + $0x14] sm:$0xf] %vm659_vm4, %v816_v13 }
 0x10f PF: > { %s13_s14 = sadd.s32 1, %s950_s14   ;;  %s1072_s12 = smov %s946_s13 }
 0x110   : > { %p10_p5 = scmp.ge.s32.totalorder %s13_s14, 4   ;;  %s1073_s13 = smov %s1075_s15 }
 0x112   :  { %12 = sbr.rel (!%p10_p5) target bundleno = 2 (0x2), region = 106 }
 0x119   :  { %698 = vsyncmov [#allocation3] }
 0x11c   :  { %s699_s5 = vpop.sfrf %698 }
 0x11d   :  { %p809_p6 = scmp.ne.s32.totalorder %s699_s5, 0 }
 0x11f   :  { %703 = shalt.err (%p809_p6)  }

// kernel: to_style_forward.3
= control target key start
LH: loop header
LB: loop body
LE: loop exit
PB: predicated region body
PF: predicated region fallthrough
CT: control target
= control target key end

     0   :  { %s4746_s0 = inlined_call_operand.vmem [shape: bf16[128,8], index: 0, kind: input, shape index: {}]   ;;  %s4747_s1 = inlined_call_operand.vmem [shape: bf16[9,32,128], index: 1, kind: input, shape index: {}]   ;;  %s4748_s2 = inlined_call_operand.vmem [shape: bf16[9,8,8], index: 2, kind: input, shape index: {}]   ;;  %s4749_s3 = inlined_call_operand.vmem [shape: f32[1,8], index: 3, kind: input, shape index: {}]   ;;  %s4750_s4 = inlined_call_operand.vmem [shape: bf16[9,8,32], index: 4, kind: input, shape index: {}]   ;;  %s4751_s5 = inlined_call_operand.vmem [shape: bf16[9,8,8], index: 5, kind: input, shape index: {}]   ;;  %s4752_s6 = inlined_call_operand.vmem [shape: f32[1,8], index: 6, kind: input, shape index: {}]   ;;  %s4753_s7 = inlined_call_operand.vmem [shape: bf16[9,2,8], index: 7, kind: input, shape index: {}]   ;;  %s4754_s8 = inlined_call_operand.vmem [shape: bf16[9,8,8], index: 8, kind: input, shape index: {}]   ;;  %s4755_s9 = inlined_call_operand.vmem [shape: f32[1,8], index: 9, kind: input, shape index: {}]   ;;  %s4756_s10 = inlined_call_operand.vmem [shape: bf16[8,8], index: 10, kind: input, shape index: {}]   ;;  %s4757_s11 = inlined_call_operand.vmem [shape: f32[1,8], index: 11, kind: input, shape index: {}]   ;;  %s4758_s12 = inlined_call_operand.hbm [shape: f32[2,8], index: 12, kind: output, shape index: {}]  }
   0x1   :  { %v4108_v0 = vld [vmem:[%s4746_s0] sm:$0xff]   ;;  %v4113_v1 = vld [vmem:[%s4746_s0 + $0x8] sm:$0xff]   ;;  %v4123_v2 = vld [vmem:[%s4746_s0 + $0x10] sm:$0xff]  }
   0x2   :  { %3489 = vmatprep.subr.bf16.mxu1 %v4108_v0  ;;  %3469 = vmatprep.subr.bf16.mxu0 %v4108_v0  ;;  %v4130_v3 = vld [vmem:[%s4746_s0 + $0x18] sm:$0xff]   ;;  %v3995_v4 = vld [vmem:[%s4747_s1 + $0x10] sm:$0xff]   ;;  %v3997_v5 = vld [vmem:[%s4747_s1] sm:$0xff]  }
   0x3   :  { %3490 = vmatpush3.bf16.msra.mxu1 %v4108_v0  ;;  %3470 = vmatpush3.bf16.msra.mxu0 %v4108_v0  ;;  %v4147_v6 = vld [vmem:[%s4746_s0 + $0x20] sm:$0xff]   ;;  %v4153_v7 = vld [vmem:[%s4746_s0 + $0x28] sm:$0xff]   ;;  %v4162_v8 = vld [vmem:[%s4746_s0 + $0x30] sm:$0xff]  }
   0x4   :  { %3491 = vmatprep.subr.bf16.mxu1 %v4113_v1  ;;  %3471 = vmatprep.subr.bf16.mxu0 %v4113_v1 }
   0x5   :  { %3505 = vmatprep.mubr.bf16.mxu1 %v3995_v4  ;;  %3485 = vmatprep.mubr.bf16.mxu0 %v3997_v5 }
   0x7   :  { %3492 = vmatpush3.bf16.msra.mxu1 %v4113_v1  ;;  %3472 = vmatpush3.bf16.msra.mxu0 %v4113_v1 }
   0x8   :  { %3493 = vmatprep.subr.bf16.mxu1 %v4123_v2  ;;  %3473 = vmatprep.subr.bf16.mxu0 %v4123_v2 }
   0xb   :  { %3494 = vmatpush3.bf16.msra.mxu1 %v4123_v2  ;;  %3474 = vmatpush3.bf16.msra.mxu0 %v4123_v2 }
   0xc   :  { %3495 = vmatprep.subr.bf16.mxu1 %v4130_v3  ;;  %3475 = vmatprep.subr.bf16.mxu0 %v4130_v3 }
   0xf   :  { %3496 = vmatpush3.bf16.msra.mxu1 %v4130_v3  ;;  %3476 = vmatpush3.bf16.msra.mxu0 %v4130_v3 }
  0x10   :  { %3497 = vmatprep.subr.bf16.mxu1 %v4147_v6  ;;  %3477 = vmatprep.subr.bf16.mxu0 %v4147_v6 }
  0x13   :  { %3498 = vmatpush3.bf16.msra.mxu1 %v4147_v6  ;;  %3478 = vmatpush3.bf16.msra.mxu0 %v4147_v6 }
  0x14   :  { %3499 = vmatprep.subr.bf16.mxu1 %v4153_v7  ;;  %3479 = vmatprep.subr.bf16.mxu0 %v4153_v7 }
  0x15   :  { %17 = vsyncpa [#allocation3], 0  ;;  %v4174_v9 = vld [vmem:[%s4746_s0 + $0x38] sm:$0xff]   ;;  %v3998_v11 = vld [vmem:[%s4747_s1 + $0x8] sm:$0xff]   ;;  %vm252_vm0 = vcmask 1043456   ;;  %vm245_vm1 = vcmask 64512  }
  0x16   :  { %v3996_v10 = vld [vmem:[%s4747_s1 + $0x18] sm:$0xff]   ;;  %v3999_v12 = vld [vmem:[%s4747_s1 + $0x20] sm:$0xff]   ;;  %v4000_v13 = vld [vmem:[%s4747_s1 + $0x28] sm:$0xff]   ;;  %vm4038_vm2 = vmmov 0   ;;  %vm1313_vm7 = vcmask 261120   ;;  %s4039_s19 = smov [#allocation2]  }
  0x17   :  { %3500 = vmatpush3.bf16.msra.mxu1 %v4153_v7  ;;  %3480 = vmatpush3.bf16.msra.mxu0 %v4153_v7  ;;  %v3128_v14 = vld [vmem:[%s4748_s2 + $0x4] sm:$0xf]  ;;  %v174_v16 = vld [vmem:[%s4748_s2] sm:$0xf]  ;;  %v4002_v18 = vld [vmem:[%s4747_s1 + $0x48] sm:$0xff]   ;;  %s3104_s20 = sshll.u32 %s4039_s19, 4  ;;  %s3105_s20 = int_to_ptr.vmem [resolvable:$true] %s3104_s20 }
  0x18   :  { %3501 = vmatprep.subr.bf16.mxu1 %v4162_v8  ;;  %3481 = vmatprep.subr.bf16.mxu0 %v4162_v8  ;;  %v254_v15 = vsel %vm252_vm0, %v3128_v14, 0  ;;  %v4001_v17 = vld [vmem:[%s4747_s1 + $0x40] sm:$0xff]   ;;  %v4005_v19 = vld [vmem:[%s4747_s1 + $0x50] sm:$0xff]   ;;  %v4006_v20 = vld [vmem:[%s4747_s1 + $0x58] sm:$0xff]   ;;  %v312_v33 = vsel %vm252_vm0, %v174_v16, 0  ;;  %vm3096_vm10 = vcmask 58368   ;;  %p4018_p1 = scmp.lt.s32.totalorder %s3105_s20, %s3105_s20 }
  0x19   :  { %v3139_v34 = vld [vmem:[%s4748_s2 + $0x8] sm:$0xf]  ;;  %v4003_v42 = vld [vmem:[%s4747_s1 + $0x30] sm:$0xff]   ;;  %v4004_v43 = vld [vmem:[%s4747_s1 + $0x38] sm:$0xff]  }
  0x1a   :  { %v440_v35 = vsel %vm252_vm0, %v3139_v34, 0  ;;  %v3148_v50 = vld [vmem:[%s4748_s2 + $0xc] sm:$0xf]  ;;  %v3157_v52 = vld [vmem:[%s4748_s2 + $0x10] sm:$0xf]  ;;  %v4010_v60 = vld [vmem:[%s4747_s1 + $0x78] sm:$0xff]  }
  0x1b   :  { %3502 = vmatpush3.bf16.msra.mxu1 %v4162_v8  ;;  %3482 = vmatpush3.bf16.msra.mxu0 %v4162_v8  ;;  %v572_v51 = vsel %vm252_vm0, %v3148_v50, 0  ;;  %v4009_v59 = vld [vmem:[%s4747_s1 + $0x70] sm:$0xff]  }
  0x1c   :  { %3503 = vmatprep.subr.bf16.mxu1 %v4174_v9  ;;  %3483 = vmatprep.subr.bf16.mxu0 %v4174_v9 }
  0x1f   :  { %3504 = vmatpush3.bf16.msra.mxu1 %v4174_v9  ;;  %3484 = vmatpush3.bf16.msra.mxu0 %v4174_v9 }
  0x20   :  { %3521 = vmatprep.subr.bf16.mxu1 %v4108_v0  ;;  %3975 = vmatprep.subr.msk.bf16.mxu0 %vm252_vm0, %v3128_v14  ;;  %v4007_v14 = vld [vmem:[%s4747_s1 + $0x60] sm:$0xff]  }
  0x22   :  { %3506 = vmatmul.mubr.bf16.vlgmr.msra.gmra.mrb[0].mxu1 %v3996_v10  ;;  %3486 = vmatmul.mubr.bf16.vlgmr.msra.gmra.mrb[0].mxu0 %v3998_v11  ;;  %v704_v11 = vsel %vm252_vm0, %v3157_v52, 0 }
  0x23   :  { %3522 = vmatpush3.bf16.msra.mxu1 %v4108_v0  ;;  %3537 = vmatprep.mubr.bf16.mxu1 %v3999_v12  ;;  %v3166_v12 = vld [vmem:[%s4748_s2 + $0x14] sm:$0xf] }
  0x24   :  { %3523 = vmatprep.subr.bf16.mxu1 %v4113_v1  ;;  %3510 = vmatpush3.bf16.msra.mxu0 %v254_v15  ;;  %v4008_v15 = vld [vmem:[%s4747_s1 + $0x68] sm:$0xff]  }
  0x25   :  { %3976 = vmatprep.subr.msk.bf16.mxu0 %vm252_vm0, %v174_v16  ;;  %v3175_v16 = vld [vmem:[%s4748_s2 + $0x18] sm:$0xf] }
  0x27   :  { %3524 = vmatpush3.bf16.msra.mxu1 %v4113_v1 }
  0x28   :  { %3525 = vmatprep.subr.bf16.mxu1 %v4123_v2 }
  0x2b   :  { %3526 = vmatpush3.bf16.msra.mxu1 %v4123_v2 }
  0x2c   :  { %3527 = vmatprep.subr.bf16.mxu1 %v4130_v3 }
  0x2f   :  { %3528 = vmatpush3.bf16.msra.mxu1 %v4130_v3 }
  0x30   :  { %3529 = vmatprep.subr.bf16.mxu1 %v4147_v6 }
  0x33   :  { %3530 = vmatpush3.bf16.msra.mxu1 %v4147_v6 }
  0x34   :  { %3531 = vmatprep.subr.bf16.mxu1 %v4153_v7 }
  0x37   :  { %3532 = vmatpush3.bf16.msra.mxu1 %v4153_v7 }
  0x38   :  { %3533 = vmatprep.subr.bf16.mxu1 %v4162_v8 }
  0x3b   :  { %3534 = vmatpush3.bf16.msra.mxu1 %v4162_v8 }
  0x3c   :  { %3535 = vmatprep.subr.bf16.mxu1 %v4174_v9 }
  0x3f   :  { %3536 = vmatpush3.bf16.msra.mxu1 %v4174_v9 }
  0x40   :  { %3573 = vmatprep.subr.bf16.mxu1 %v4108_v0 }
  0x42   :  { %3538 = vmatmul.mubr.bf16.vlgmr.msra.gmra.mrb[4].mxu1 %v4000_v13  ;;  %v836_v13 = vsel %vm252_vm0, %v3166_v12, 0 }
  0x43   :  { %3574 = vmatpush3.bf16.msra.mxu1 %v4108_v0  ;;  %3589 = vmatprep.mubr.bf16.mxu1 %v4001_v17  ;;  %v968_v17 = vsel %vm252_vm0, %v3175_v16, 0 }
  0x44   :  { %3575 = vmatprep.subr.bf16.mxu1 %v4113_v1 }
  0x47   :  { %3576 = vmatpush3.bf16.msra.mxu1 %v4113_v1 }
  0x48   :  { %3577 = vmatprep.subr.bf16.mxu1 %v4123_v2 }
  0x4b   :  { %3578 = vmatpush3.bf16.msra.mxu1 %v4123_v2 }
  0x4c   :  { %3579 = vmatprep.subr.bf16.mxu1 %v4130_v3 }
  0x4f   :  { %3580 = vmatpush3.bf16.msra.mxu1 %v4130_v3 }
  0x50   :  { %3581 = vmatprep.subr.bf16.mxu1 %v4147_v6 }
  0x53   :  { %3582 = vmatpush3.bf16.msra.mxu1 %v4147_v6 }
  0x54   :  { %3583 = vmatprep.subr.bf16.mxu1 %v4153_v7 }
  0x57   :  { %3584 = vmatpush3.bf16.msra.mxu1 %v4153_v7 }
  0x58   :  { %3585 = vmatprep.subr.bf16.mxu1 %v4162_v8 }
  0x5b   :  { %3586 = vmatpush3.bf16.msra.mxu1 %v4162_v8 }
  0x5c   :  { %3587 = vmatprep.subr.bf16.mxu1 %v4174_v9 }
  0x5f   :  { %3588 = vmatpush3.bf16.msra.mxu1 %v4174_v9 }
  0x60   :  { %3599 = vmatprep.subr.bf16.mxu1 %v4108_v0 }
  0x62   :  { %3590 = vmatmul.mubr.bf16.vlgmr.msra.gmra.mrb[8].mxu1 %v4002_v18 }
  0x63   :  { %3600 = vmatpush3.bf16.msra.mxu1 %v4108_v0  ;;  %3615 = vmatprep.mubr.bf16.mxu1 %v4005_v19  ;;  %v3184_v19 = vld [vmem:[%s4748_s2 + $0x1c] sm:$0xf] }
  0x64   :  { %3601 = vmatprep.subr.bf16.mxu1 %v4113_v1 }
  0x67   :  { %3602 = vmatpush3.bf16.msra.mxu1 %v4113_v1 }
  0x68   :  { %3603 = vmatprep.subr.bf16.mxu1 %v4123_v2 }
  0x6b   :  { %3604 = vmatpush3.bf16.msra.mxu1 %v4123_v2 }
  0x6c   :  { %3605 = vmatprep.subr.bf16.mxu1 %v4130_v3 }
  0x6f   :  { %3606 = vmatpush3.bf16.msra.mxu1 %v4130_v3 }
  0x70   :  { %3607 = vmatprep.subr.bf16.mxu1 %v4147_v6 }
  0x73   :  { %3608 = vmatpush3.bf16.msra.mxu1 %v4147_v6 }
  0x74   :  { %3609 = vmatprep.subr.bf16.mxu1 %v4153_v7 }
  0x77   :  { %3610 = vmatpush3.bf16.msra.mxu1 %v4153_v7 }
  0x78   :  { %3611 = vmatprep.subr.bf16.mxu1 %v4162_v8 }
  0x7b   :  { %3612 = vmatpush3.bf16.msra.mxu1 %v4162_v8 }
  0x7c   :  { %3613 = vmatprep.subr.bf16.mxu1 %v4174_v9 }
  0x7f   :  { %3614 = vmatpush3.bf16.msra.mxu1 %v4174_v9 }
  0x80   :  { %3651 = vmatprep.subr.bf16.mxu1 %v4108_v0 }
  0x82   :  { %3616 = vmatmul.mubr.bf16.vlgmr.msra.gmra.mrb[12].mxu1 %v4006_v20 }
  0x83   :  { %3652 = vmatpush3.bf16.msra.mxu1 %v4108_v0  ;;  %3667 = vmatprep.mubr.bf16.mxu1 %v4009_v59 }
  0x84   :  { %3653 = vmatprep.subr.bf16.mxu1 %v4113_v1 }
  0x87   :  { %3654 = vmatpush3.bf16.msra.mxu1 %v4113_v1 }
  0x88   :  { %3655 = vmatprep.subr.bf16.mxu1 %v4123_v2 }
  0x8b   :  { %3656 = vmatpush3.bf16.msra.mxu1 %v4123_v2 }
  0x8c   :  { %3657 = vmatprep.subr.bf16.mxu1 %v4130_v3 }
  0x8f   :  { %3658 = vmatpush3.bf16.msra.mxu1 %v4130_v3 }
  0x90   :  { %3659 = vmatprep.subr.bf16.mxu1 %v4147_v6 }
  0x93   :  { %3660 = vmatpush3.bf16.msra.mxu1 %v4147_v6 }
  0x94   :  { %3661 = vmatprep.subr.bf16.mxu1 %v4153_v7 }
  0x97   :  { %3662 = vmatpush3.bf16.msra.mxu1 %v4153_v7 }
  0x98   :  { %3663 = vmatprep.subr.bf16.mxu1 %v4162_v8 }
  0x9b   :  { %3664 = vmatpush3.bf16.msra.mxu1 %v4162_v8 }
  0x9c   :  { %3665 = vmatprep.subr.bf16.mxu1 %v4174_v9 }
  0x9f   :  { %3666 = vmatpush3.bf16.msra.mxu1 %v4174_v9 }
  0xa2   :  { %3668 = vmatmul.mubr.bf16.vlgmr.msra.gmra.mrb[16].mxu1 %v4010_v60 }
  0xf5   :  { %v3507_v21 = vpop.f32.mrb[0].mxu1  ;;  %v3487_v22 = vpop.f32.mrb[0].mxu0 }
  0xf6   :  { %v226_v23 = vpop.f32.mrb[1].mxu1  ;;  %v157_v24 = vpop.f32.mrb[1].mxu0 }
  0xf7   :  { %v3508_v25 = vpop.f32.mrb[2].mxu1  ;;  %v3488_v26 = vpop.f32.mrb[2].mxu0 }
  0xf8   :  { %v242_v27 = vpack.c.bf16 %v3508_v25, %v3507_v21  ;;  %v229_v28 = vpop.f32.mrb[3].mxu1  ;;  %v173_v29 = vpack.c.bf16 %v3488_v26, %v3487_v22  ;;  %v160_v30 = vpop.f32.mrb[3].mxu0 }
  0xf9   :  { %v241_v31 = vpack.c.bf16 %v229_v28, %v226_v23  ;;  %v172_v32 = vpack.c.bf16 %v160_v30, %v157_v24 }
  0xfb   :  { %3511 = vmatprep.mubr.msk.bf16.mxu0 %vm245_vm1, %v241_v31  ;;  %v1100_v31 = vsel %vm252_vm0, %v3184_v19, 0 }
  0xfc   :  { %3512 = vmatmul.mubr.msk.bf16.vlgmr.msra.gmra.mrb[4].mxu0 %vm245_vm1, %v242_v27 }
  0xfd   :  { %3516 = vmatpush3.bf16.msra.mxu0 %v312_v33  ;;  %3517 = vmatprep.mubr.msk.bf16.mxu0 %vm245_vm1, %v172_v32  ;;  %v4011_v32 = vld [vmem:[%s4747_s1 + $0x80] sm:$0xff]  }
  0xfe   :  { %3977 = vmatprep.subr.msk.bf16.mxu0 %vm252_vm0, %v3139_v34 }
 0x108   :  { %3518 = vmatmul.mubr.msk.bf16.vlgmr.msra.gmra.mrb[4].mxu0 %vm245_vm1, %v173_v29 }
 0x109   :  { %3542 = vmatpush3.bf16.msra.mxu0 %v440_v35  ;;  %v3196_v35 = vld [vmem:[%s4749_s3] ss:$0 sm:$0xff] }
 0x10a   :  { %3547 = vmatprep.subr.bf16.mxu0 %v4108_v0 }
 0x115   :  { %v3539_v36 = vpop.f32.mrb[4].mxu1 }
 0x116   :  { %v414_v37 = vpop.f32.mrb[5].mxu1 }
 0x117   :  { %v3540_v38 = vpop.f32.mrb[6].mxu1 }
 0x118   :  { %v430_v39 = vpack.c.bf16 %v3540_v38, %v3539_v36  ;;  %v417_v40 = vpop.f32.mrb[7].mxu1 }
 0x119   :  { %v429_v41 = vpack.c.bf16 %v417_v40, %v414_v37 }
 0x11b   :  { %3543 = vmatprep.mubr.msk.bf16.mxu0 %vm245_vm1, %v429_v41 }
 0x11c   :  { %3544 = vmatmul.mubr.msk.bf16.vlgmr.msra.gmra.mrb[4].mxu0 %vm245_vm1, %v430_v39 }
 0x11d   :  { %3548 = vmatpush3.bf16.msra.mxu0 %v4108_v0  ;;  %3563 = vmatprep.mubr.bf16.mxu0 %v4003_v42 }
 0x11e   :  { %3549 = vmatprep.subr.bf16.mxu0 %v4113_v1 }
 0x121   :  { %3550 = vmatpush3.bf16.msra.mxu0 %v4113_v1 }
 0x122   :  { %3551 = vmatprep.subr.bf16.mxu0 %v4123_v2 }
 0x125   :  { %3552 = vmatpush3.bf16.msra.mxu0 %v4123_v2 }
 0x126   :  { %3553 = vmatprep.subr.bf16.mxu0 %v4130_v3 }
 0x129   :  { %3554 = vmatpush3.bf16.msra.mxu0 %v4130_v3 }
 0x12a   :  { %3555 = vmatprep.subr.bf16.mxu0 %v4147_v6 }
 0x12d   :  { %3556 = vmatpush3.bf16.msra.mxu0 %v4147_v6 }
 0x12e   :  { %3557 = vmatprep.subr.bf16.mxu0 %v4153_v7 }
 0x131   :  { %3558 = vmatpush3.bf16.msra.mxu0 %v4153_v7 }
 0x132   :  { %3559 = vmatprep.subr.bf16.mxu0 %v4162_v8 }
 0x135   :  { %3560 = vmatpush3.bf16.msra.mxu0 %v4162_v8  ;;  %v3591_v44 = vpop.f32.mrb[8].mxu1 }
 0x136   :  { %3561 = vmatprep.subr.bf16.mxu0 %v4174_v9  ;;  %v678_v45 = vpop.f32.mrb[9].mxu1 }
 0x137   :  { %v3592_v46 = vpop.f32.mrb[10].mxu1 }
 0x138   :  { %v694_v47 = vpack.c.bf16 %v3592_v46, %v3591_v44  ;;  %v681_v48 = vpop.f32.mrb[11].mxu1 }
 0x139   :  { %3562 = vmatpush3.bf16.msra.mxu0 %v4174_v9  ;;  %v693_v49 = vpack.c.bf16 %v681_v48, %v678_v45 }
 0x13a   :  { %3978 = vmatprep.subr.msk.bf16.mxu0 %vm252_vm0, %v3148_v50 }
 0x13c   :  { %3564 = vmatmul.mubr.bf16.vlgmr.msra.gmra.mrb[8].mxu0 %v4004_v43 }
 0x13d   :  { %3568 = vmatpush3.bf16.msra.mxu0 %v572_v51 }
 0x13e   :  { %3979 = vmatprep.subr.msk.bf16.mxu0 %vm252_vm0, %v3157_v52 }
 0x155   :  { %v3617_v53 = vpop.f32.mrb[12].mxu1 }
 0x156   :  { %v810_v54 = vpop.f32.mrb[13].mxu1 }
 0x157   :  { %v3618_v55 = vpop.f32.mrb[14].mxu1 }
 0x158   :  { %v826_v56 = vpack.c.bf16 %v3618_v55, %v3617_v53  ;;  %v813_v57 = vpop.f32.mrb[15].mxu1  ;;  %v3198_v55 = vld [vmem:[%s4750_s4 + $0x4] sm:$0xf] }
 0x159   :  { %v825_v58 = vpack.c.bf16 %v813_v57, %v810_v54  ;;  %v1312_v54 = vld [vmem:[%s4750_s4] sm:$0xf] }
 0x175   :  { %v3669_v18 = vpop.f32.mrb[16].mxu1 }
 0x176   :  { %v1074_v20 = vpop.f32.mrb[17].mxu1 }
 0x177   :  { %v3670_v21 = vpop.f32.mrb[18].mxu1 }
 0x178   :  { %v1090_v22 = vpack.c.bf16 %v3670_v21, %v3669_v18  ;;  %v1077_v23 = vpop.f32.mrb[19].mxu1  ;;  %v3219_v18 = vld [vmem:[%s4750_s4 + $0x18] sm:$0xf]  ;;  %v3205_v21 = vld [vmem:[%s4751_s5 + $0x8] sm:$0xf] }
 0x179   :  { %v1089_v24 = vpack.c.bf16 %v1077_v23, %v1074_v20  ;;  %v3227_v20 = vld [vmem:[%s4750_s4 + $0x20] sm:$0xf] }
 0x20f   :  { %v3565_v61 = vpop.f32.mrb[8].mxu0 }
 0x210   :  { %v546_v62 = vpop.f32.mrb[9].mxu0 }
 0x211   :  { %v3566_v63 = vpop.f32.mrb[10].mxu0 }
 0x212   :  { %v562_v4 = vpack.c.bf16 %v3566_v63, %v3565_v61  ;;  %v549_v5 = vpop.f32.mrb[11].mxu0 }
 0x213   :  { %v561_v10 = vpack.c.bf16 %v549_v5, %v546_v62  ;;  %v1358_v62 = vld [vmem:[%s4751_s5] sm:$0xf] }
 0x215   :  { %3569 = vmatprep.mubr.msk.bf16.mxu0 %vm245_vm1, %v561_v10  ;;  %v1457_v10 = vsel %vm252_vm0, %v1358_v62, 0 }
 0x216   :  { %3570 = vmatmul.mubr.msk.bf16.vlgmr.msra.gmra.mrb[4].mxu0 %vm245_vm1, %v562_v4 }
 0x217   :  { %3595 = vmatprep.mubr.msk.bf16.mxu0 %vm245_vm1, %v693_v49  ;;  %3594 = vmatpush3.bf16.msra.mxu0 %v704_v11 }
 0x218   :  { %3980 = vmatprep.subr.msk.bf16.mxu0 %vm252_vm0, %v3166_v12 }
 0x222   :  { %3596 = vmatmul.mubr.msk.bf16.vlgmr.msra.gmra.mrb[4].mxu0 %vm245_vm1, %v694_v47 }
 0x223   :  { %3620 = vmatpush3.bf16.msra.mxu0 %v836_v13  ;;  %3621 = vmatprep.mubr.msk.bf16.mxu0 %vm245_vm1, %v825_v58 }
 0x224   :  { %3625 = vmatprep.subr.bf16.mxu0 %v4108_v0 }
 0x22e   :  { %3622 = vmatmul.mubr.msk.bf16.vlgmr.msra.gmra.mrb[4].mxu0 %vm245_vm1, %v826_v56  ;;  %v3200_v56 = vld [vmem:[%s4751_s5 + $0x4] sm:$0xf] }
 0x22f   :  { %3626 = vmatpush3.bf16.msra.mxu0 %v4108_v0  ;;  %3641 = vmatprep.mubr.bf16.mxu0 %v4007_v14  ;;  %v1411_v57 = vsel %vm252_vm0, %v3200_v56, 0  ;;  %v3203_v14 = vld [vmem:[%s4750_s4 + $0x8] sm:$0xf] }
 0x230   :  { %3627 = vmatprep.subr.bf16.mxu0 %v4113_v1 }
 0x233   :  { %3628 = vmatpush3.bf16.msra.mxu0 %v4113_v1 }
 0x234   :  { %3629 = vmatprep.subr.bf16.mxu0 %v4123_v2 }
 0x237   :  { %3630 = vmatpush3.bf16.msra.mxu0 %v4123_v2 }
 0x238   :  { %3631 = vmatprep.subr.bf16.mxu0 %v4130_v3 }
 0x23b   :  { %3632 = vmatpush3.bf16.msra.mxu0 %v4130_v3 }
 0x23c   :  { %3633 = vmatprep.subr.bf16.mxu0 %v4147_v6 }
 0x23f   :  { %3634 = vmatpush3.bf16.msra.mxu0 %v4147_v6 }
 0x240   :  { %3635 = vmatprep.subr.bf16.mxu0 %v4153_v7 }
 0x243   :  { %3636 = vmatpush3.bf16.msra.mxu0 %v4153_v7 }
 0x244   :  { %3637 = vmatprep.subr.bf16.mxu0 %v4162_v8 }
 0x247   :  { %3638 = vmatpush3.bf16.msra.mxu0 %v4162_v8 }
 0x248   :  { %3639 = vmatprep.subr.bf16.mxu0 %v4174_v9 }
 0x24b   :  { %3640 = vmatpush3.bf16.msra.mxu0 %v4174_v9 }
 0x24c   :  { %3981 = vmatprep.subr.msk.bf16.mxu0 %vm252_vm0, %v3175_v16  ;;  %v3211_v16 = vld [vmem:[%s4750_s4 + $0x10] sm:$0xf] }
 0x24e   :  { %3642 = vmatmul.mubr.bf16.vlgmr.msra.gmra.mrb[12].mxu0 %v4008_v15  ;;  %v3207_v15 = vld [vmem:[%s4750_s4 + $0xc] sm:$0xf] }
 0x24f   :  { %3646 = vmatpush3.bf16.msra.mxu0 %v968_v17  ;;  %v3215_v17 = vld [vmem:[%s4750_s4 + $0x14] sm:$0xf] }
 0x250   :  { %3982 = vmatprep.subr.msk.bf16.mxu0 %vm252_vm0, %v3184_v19  ;;  %v3223_v19 = vld [vmem:[%s4750_s4 + $0x1c] sm:$0xf] }
 0x321   :  { %v3643_v25 = vpop.f32.mrb[12].mxu0 }
 0x322   :  { %v942_v26 = vpop.f32.mrb[13].mxu0 }
 0x323   :  { %v3644_v27 = vpop.f32.mrb[14].mxu0 }
 0x324   :  { %v958_v28 = vpack.c.bf16 %v3644_v27, %v3643_v25  ;;  %v945_v29 = vpop.f32.mrb[15].mxu0 }
 0x325   :  { %v957_v30 = vpack.c.bf16 %v945_v29, %v942_v26 }
 0x327   :  { %3647 = vmatprep.mubr.msk.bf16.mxu0 %vm245_vm1, %v957_v30 }
 0x328   :  { %3648 = vmatmul.mubr.msk.bf16.vlgmr.msra.gmra.mrb[4].mxu0 %vm245_vm1, %v958_v28 }
 0x329   :  { %3672 = vmatpush3.bf16.msra.mxu0 %v1100_v31  ;;  %3673 = vmatprep.mubr.msk.bf16.mxu0 %vm245_vm1, %v1089_v24 }
 0x32a   :  { %3677 = vmatprep.subr.bf16.mxu0 %v4108_v0 }
 0x334   :  { %3674 = vmatmul.mubr.msk.bf16.vlgmr.msra.gmra.mrb[4].mxu0 %vm245_vm1, %v1090_v22  ;;  %v1551_v22 = vsel %vm252_vm0, %v3205_v21, 0 }
 0x335   :  { %3678 = vmatpush3.bf16.msra.mxu0 %v4108_v0  ;;  %3693 = vmatprep.mubr.bf16.mxu0 %v4011_v32  ;;  %v4012_v0 = vld [vmem:[%s4747_s1 + $0x88] sm:$0xff]  }
 0x336   :  { %3679 = vmatprep.subr.bf16.mxu0 %v4113_v1  ;;  %v3209_v32 = vld [vmem:[%s4751_s5 + $0xc] sm:$0xf] }
 0x339   :  { %3680 = vmatpush3.bf16.msra.mxu0 %v4113_v1  ;;  %v3193_v1 = vld [vmem:[%s4748_s2 + $0x20] sm:$0xf] }
 0x33a   :  { %3681 = vmatprep.subr.bf16.mxu0 %v4123_v2 }
 0x33d   :  { %3682 = vmatpush3.bf16.msra.mxu0 %v4123_v2  ;;  %v1232_v2 = vsel %vm252_vm0, %v3193_v1, 0 }
 0x33e   :  { %3683 = vmatprep.subr.bf16.mxu0 %v4130_v3 }
 0x341   :  { %3684 = vmatpush3.bf16.msra.mxu0 %v4130_v3 }
 0x342   :  { %3685 = vmatprep.subr.bf16.mxu0 %v4147_v6 }
 0x345   :  { %3686 = vmatpush3.bf16.msra.mxu0 %v4147_v6 }
 0x346   :  { %3687 = vmatprep.subr.bf16.mxu0 %v4153_v7 }
 0x349   :  { %3688 = vmatpush3.bf16.msra.mxu0 %v4153_v7 }
 0x34a   :  { %3689 = vmatprep.subr.bf16.mxu0 %v4162_v8 }
 0x34d   :  { %3690 = vmatpush3.bf16.msra.mxu0 %v4162_v8 }
 0x34e   :  { %3691 = vmatprep.subr.bf16.mxu0 %v4174_v9 }
 0x351   :  { %3692 = vmatpush3.bf16.msra.mxu0 %v4174_v9  ;;  %v4037_v9 = vmov 0.0  }
 0x352   :  { %3983 = vmatprep.subr.msk.bf16.mxu0 %vm252_vm0, %v3193_v1  ;;  %3703 = vmatprep.subr.bf16.mxu1 %v4037_v9 }
 0x353   :  { %3707 = vmatprep.mubr.msk.bf16.mxu1 %vm4038_vm2, %v4037_v9 }
 0x354   :  { %3694 = vmatmul.mubr.bf16.vlgmr.msra.gmra.mrb[16].mxu0 %v4012_v0 }
 0x355   :  { %3698 = vmatpush3.bf16.msra.mxu0 %v1232_v2 }
 0x356   :  { %3739 = vmatprep.subr.bf16.mxu0 %v4037_v9 }
 0x427   :  { %v3695_v3 = vpop.f32.mrb[16].mxu0 }
 0x428   :  { %v1206_v6 = vpop.f32.mrb[17].mxu0 }
 0x429   :  { %v3696_v7 = vpop.f32.mrb[18].mxu0 }
 0x42a   :  { %v1222_v8 = vpack.c.bf16 %v3696_v7, %v3695_v3  ;;  %v1209_v33 = vpop.f32.mrb[19].mxu0  ;;  %v1646_v3 = vsel %vm252_vm0, %v3209_v32, 0 }
 0x42b   :  { %v1221_v34 = vpack.c.bf16 %v1209_v33, %v1206_v6 }
 0x42d   :  { %3699 = vmatprep.mubr.msk.bf16.mxu0 %vm245_vm1, %v1221_v34 }
 0x42e   :  { %3700 = vmatmul.mubr.msk.bf16.vlgmr.msra.gmra.mrb[4].mxu0 %vm245_vm1, %v1222_v8  ;;  %v3213_v8 = vld [vmem:[%s4751_s5 + $0x10] sm:$0xf] }
 0x42f   :  { %3741 = vmatprep.mubr.msk.bf16.mxu0 %vm4038_vm2, %v4037_v9  ;;  %3740 = vmatpush3.bf16.msra.mxu0 %v1551_v22 }
 0x430   :  { %3753 = vmatprep.subr.bf16.mxu0 %v4037_v9 }
 0x501   :  { %v3701_v36 = vpop.f32.mrb[4].mxu0 }
 0x502   :  { %v1296_v37 = vadd.f32 %v3701_v36, %v3196_v35  ;;  %v1268_v38 = vpop.f32.mrb[5].mxu0  ;;  %v1741_v36 = vsel %vm252_vm0, %v3213_v8, 0 }
 0x503   :  { %v1294_v39 = vadd.f32 %v3196_v35, %v1268_v38  ;;  %v3702_v40 = vpop.f32.mrb[6].mxu0 }
 0x504   :  { %v1304_v41 = vmul.f32 0.01, %v1296_v37  ;;  %v1297_v42 = vadd.f32 %v3702_v40, %v3196_v35  ;;  %v1271_v43 = vpop.f32.mrb[7].mxu0  ;;  %vm1300_vm3 = vcmp.ge.f32.partialorder %v1296_v37, 0.0 }
 0x505   :  { %v1302_v44 = vmul.f32 0.01, %v1294_v39  ;;  %v1295_v45 = vadd.f32 %v3196_v35, %v1271_v43  ;;  %vm1298_vm4 = vcmp.ge.f32.partialorder %v1294_v39, 0.0 }
 0x506   :  { %vm1301_vm5 = vcmp.ge.f32.partialorder %v1297_v42, 0.0  ;;  %v1305_v46 = vmul.f32 0.01, %v1297_v42  ;;  %v1308_v48 = vsel %vm1300_vm3, %v1296_v37, %v1304_v41 }
 0x507   :  { %vm1299_vm6 = vcmp.ge.f32.partialorder %v1295_v45, 0.0  ;;  %v1303_v47 = vmul.f32 0.01, %v1295_v45  ;;  %v1306_v50 = vsel %vm1298_vm4, %v1294_v39, %v1302_v44  ;;  %v3217_v39 = vld [vmem:[%s4751_s5 + $0x14] sm:$0xf] }
 0x508   :  { %v1309_v49 = vsel %vm1301_vm5, %v1297_v42, %v1305_v46  ;;  %v1836_v43 = vsel %vm252_vm0, %v3217_v39, 0  ;;  %v3221_v46 = vld [vmem:[%s4751_s5 + $0x18] sm:$0xf] }
 0x509   :  { %v4415_v51 = vpack.c.bf16 %v1309_v49, %v1308_v48  ;;  %v1307_v52 = vsel %vm1299_vm6, %v1295_v45, %v1303_v47 }
 0x50a   :  { %v4417_v53 = vpack.c.bf16 %v1307_v52, %v1306_v50  ;;  %v1931_v50 = vsel %vm252_vm0, %v3221_v46, 0 }
 0x50c   :  { %3704 = vmatpush3.bf16.msra.mxu1 %v4417_v53 }
 0x50d   :  { %3705 = vmatprep.subr.bf16.mxu1 %v4037_v9 }
 0x510   :  { %3706 = vmatpush3.bf16.msra.mxu1 %v4415_v51 }
 0x511   :  { %3711 = vmatprep.subr.bf16.mxu1 %v4037_v9 }
 0x513   :  { %3708 = vmatmul.mubr.msk.bf16.vlgmr.msra.gmra.mrb[20].mxu1 %vm1313_vm7, %v1312_v54 }
 0x514   :  { %3712 = vmatpush3.bf16.msra.mxu1 %v4417_v53  ;;  %3715 = vmatprep.mubr.msk.bf16.mxu1 %vm4038_vm2, %v4037_v9 }
 0x515   :  { %3713 = vmatprep.subr.bf16.mxu1 %v4037_v9 }
 0x518   :  { %3714 = vmatpush3.bf16.msra.mxu1 %v4415_v51 }
 0x519   :  { %3719 = vmatprep.subr.bf16.mxu1 %v4037_v9 }
 0x51b   :  { %3716 = vmatmul.mubr.msk.bf16.vlgmr.msra.gmra.mrb[24].mxu1 %vm1313_vm7, %v3198_v55 }
 0x51c   :  { %3721 = vmatprep.mubr.msk.bf16.mxu1 %vm4038_vm2, %v4037_v9  ;;  %3720 = vmatpush3.bf16.msra.mxu1 %v1411_v57 }
 0x51d   :  { %3725 = vmatprep.subr.bf16.mxu1 %v4037_v9 }
 0x5e6   :  { %v1351_v58 = vpop.f32.mrb[20].mxu1 }
 0x5e7   :  { %v3709_v59 = vpop.f32.mrb[21].mxu1  ;;  %v1357_v13 = vpack.c.bf16 %v1351_v58, %v1351_v58 }
 0x5e8   :  { %v1354_v60 = vpop.f32.mrb[22].mxu1 }
 0x5e9   :  { %v3710_v61 = vpop.f32.mrb[23].mxu1  ;;  %v3229_v60 = vld [vmem:[%s4751_s5 + $0x20] sm:$0xf] }
 0x5ee   :  { %v1398_v63 = vpop.f32.mrb[24].mxu1 }
 0x5ef   :  { %v1404_v4 = vpack.c.bf16 %v1398_v63, %v1398_v63  ;;  %v3717_v5 = vpop.f32.mrb[25].mxu1 }
 0x5f0   :  { %v1401_v11 = vpop.f32.mrb[26].mxu1 }
 0x5f1   :  { %v3718_v12 = vpop.f32.mrb[27].mxu1  ;;  %3722 = vmatmul.mubr.msk.bf16.vlgmr.msra.gmra.mrb[28].mxu1 %vm245_vm1, %v1404_v4  ;;  %v2121_v4 = vsel %vm252_vm0, %v3229_v60, 0 }
 0x5f2   :  { %3726 = vmatpush3.bf16.msra.mxu1 %v1457_v10  ;;  %3727 = vmatprep.mubr.msk.bf16.mxu1 %vm4038_vm2, %v4037_v9 }
 0x5f3   :  { %3731 = vmatprep.subr.bf16.mxu1 %v4037_v9 }
 0x5f9   :  { %3728 = vmatmul.mubr.msk.bf16.vlgmr.msra.gmra.mrb[32].mxu1 %vm245_vm1, %v1357_v13 }
 0x5fa   :  { %3732 = vmatpush3.bf16.msra.mxu1 %v4417_v53  ;;  %3735 = vmatprep.mubr.msk.bf16.mxu1 %vm4038_vm2, %v4037_v9 }
 0x5fb   :  { %3733 = vmatprep.subr.bf16.mxu1 %v4037_v9 }
 0x5fe   :  { %3734 = vmatpush3.bf16.msra.mxu1 %v4415_v51 }
 0x5ff   :  { %3745 = vmatprep.subr.bf16.mxu1 %v4037_v9 }
 0x601   :  { %3736 = vmatmul.mubr.msk.bf16.vlgmr.msra.gmra.mrb[36].mxu1 %vm1313_vm7, %v3203_v14 }
 0x602   :  { %3746 = vmatpush3.bf16.msra.mxu1 %v4417_v53  ;;  %3749 = vmatprep.mubr.msk.bf16.mxu1 %vm4038_vm2, %v4037_v9 }
 0x603   :  { %3747 = vmatprep.subr.bf16.mxu1 %v4037_v9 }
 0x606   :  { %3748 = vmatpush3.bf16.msra.mxu1 %v4415_v51 }
 0x607   :  { %3759 = vmatprep.subr.bf16.mxu1 %v4037_v9 }
 0x609   :  { %3750 = vmatmul.mubr.msk.bf16.vlgmr.msra.gmra.mrb[40].mxu1 %vm1313_vm7, %v3207_v15 }
 0x60a   :  { %3760 = vmatpush3.bf16.msra.mxu1 %v4417_v53  ;;  %3763 = vmatprep.mubr.msk.bf16.mxu1 %vm4038_vm2, %v4037_v9 }
 0x60b   :  { %3761 = vmatprep.subr.bf16.mxu1 %v4037_v9 }
 0x60e   :  { %3762 = vmatpush3.bf16.msra.mxu1 %v4415_v51 }
 0x60f   :  { %3773 = vmatprep.subr.bf16.mxu1 %v4037_v9 }
 0x611   :  { %3764 = vmatmul.mubr.msk.bf16.vlgmr.msra.gmra.mrb[44].mxu1 %vm1313_vm7, %v3211_v16 }
 0x612   :  { %3774 = vmatpush3.bf16.msra.mxu1 %v4417_v53  ;;  %3777 = vmatprep.mubr.msk.bf16.mxu1 %vm4038_vm2, %v4037_v9 }
 0x613   :  { %3775 = vmatprep.subr.bf16.mxu1 %v4037_v9 }
 0x616   :  { %3776 = vmatpush3.bf16.msra.mxu1 %v4415_v51 }
 0x617   :  { %3787 = vmatprep.subr.bf16.mxu1 %v4037_v9 }
 0x619   :  { %3778 = vmatmul.mubr.msk.bf16.vlgmr.msra.gmra.mrb[48].mxu1 %vm1313_vm7, %v3215_v17 }
 0x61a   :  { %3788 = vmatpush3.bf16.msra.mxu1 %v4417_v53  ;;  %3791 = vmatprep.mubr.msk.bf16.mxu1 %vm4038_vm2, %v4037_v9 }
 0x61b   :  { %3789 = vmatprep.subr.bf16.mxu1 %v4037_v9 }
 0x61e   :  { %3790 = vmatpush3.bf16.msra.mxu1 %v4415_v51 }
 0x61f   :  { %3801 = vmatprep.subr.bf16.mxu1 %v4037_v9 }
 0x621   :  { %3792 = vmatmul.mubr.msk.bf16.vlgmr.msra.gmra.mrb[52].mxu1 %vm1313_vm7, %v3219_v18 }
 0x622   :  { %3802 = vmatpush3.bf16.msra.mxu1 %v4417_v53  ;;  %3805 = vmatprep.mubr.msk.bf16.mxu1 %vm4038_vm2, %v4037_v9 }
 0x623   :  { %3803 = vmatprep.subr.bf16.mxu1 %v4037_v9 }
 0x626   :  { %3804 = vmatpush3.bf16.msra.mxu1 %v4415_v51 }
 0x627   :  { %3815 = vmatprep.subr.bf16.mxu1 %v4037_v9 }
 0x629   :  { %3806 = vmatmul.mubr.msk.bf16.vlgmr.msra.gmra.mrb[56].mxu1 %vm1313_vm7, %v3223_v19 }
 0x62a   :  { %3816 = vmatpush3.bf16.msra.mxu1 %v4417_v53  ;;  %3819 = vmatprep.mubr.msk.bf16.mxu1 %vm4038_vm2, %v4037_v9  ;;  %v3225_v53 = vld [vmem:[%s4751_s5 + $0x1c] sm:$0xf] }
 0x62b   :  { %3817 = vmatprep.subr.bf16.mxu1 %v4037_v9  ;;  %v2026_v57 = vsel %vm252_vm0, %v3225_v53, 0 }
 0x62e   :  { %3818 = vmatpush3.bf16.msra.mxu1 %v4415_v51 }
 0x62f   :  { %3829 = vmatprep.subr.bf16.mxu1 %v4037_v9 }
 0x631   :  { %3820 = vmatmul.mubr.msk.bf16.vlgmr.msra.gmra.mrb[60].mxu1 %vm1313_vm7, %v3227_v20 }
 0x632   :  { %3831 = vmatprep.mubr.msk.bf16.mxu1 %vm4038_vm2, %v4037_v9 }
 0x6c4   :  { %v1447_v23 = vpop.f32.mrb[28].mxu1 }
 0x6c5   :  { %v3723_v24 = vpop.f32.mrb[29].mxu1 }
 0x6c6   :  { %v1450_v25 = vpop.f32.mrb[30].mxu1 }
 0x6c7   :  { %v3724_v26 = vpop.f32.mrb[31].mxu1 }
 0x6cc   :  { %v1493_v27 = vpop.f32.mrb[32].mxu1 }
 0x6cd   :  { %v4530_v28 = vadd.f32 %v1493_v27, %v1447_v23  ;;  %v3729_v29 = vpop.f32.mrb[33].mxu1 }
 0x6ce   :  { %v1496_v30 = vpop.f32.mrb[34].mxu1 }
 0x6cf   :  { %v3730_v31 = vpop.f32.mrb[35].mxu1 }
 0x6d4   :  { %v1538_v0 = vpop.f32.mrb[36].mxu1 }
 0x6d5   :  { %v1544_v1 = vpack.c.bf16 %v1538_v0, %v1538_v0  ;;  %v3737_v2 = vpop.f32.mrb[37].mxu1 }
 0x6d6   :  { %v1541_v6 = vpop.f32.mrb[38].mxu1 }
 0x6d7   :  { %v3738_v7 = vpop.f32.mrb[39].mxu1  ;;  %3742 = vmatmul.mubr.msk.bf16.vlgmr.msra.gmra.mrb[20].mxu0 %vm245_vm1, %v1544_v1 }
 0x6d8   :  { %3754 = vmatpush3.bf16.msra.mxu0 %v1646_v3  ;;  %3755 = vmatprep.mubr.msk.bf16.mxu0 %vm4038_vm2, %v4037_v9 }
 0x6d9   :  { %3767 = vmatprep.subr.bf16.mxu0 %v4037_v9 }
 0x6dc   :  { %v1633_v33 = vpop.f32.mrb[40].mxu1 }
 0x6dd   :  { %v1639_v34 = vpack.c.bf16 %v1633_v33, %v1633_v33  ;;  %v3751_v35 = vpop.f32.mrb[41].mxu1 }
 0x6de   :  { %v1636_v37 = vpop.f32.mrb[42].mxu1 }
 0x6df   :  { %v3752_v38 = vpop.f32.mrb[43].mxu1  ;;  %3756 = vmatmul.mubr.msk.bf16.vlgmr.msra.gmra.mrb[24].mxu0 %vm245_vm1, %v1639_v34 }
 0x6e0   :  { %3768 = vmatpush3.bf16.msra.mxu0 %v1741_v36  ;;  %3769 = vmatprep.mubr.msk.bf16.mxu0 %vm4038_vm2, %v4037_v9 }
 0x6e1   :  { %3781 = vmatprep.subr.bf16.mxu0 %v4037_v9 }
 0x6e4   :  { %v1728_v40 = vpop.f32.mrb[44].mxu1 }
 0x6e5   :  { %v1734_v41 = vpack.c.bf16 %v1728_v40, %v1728_v40  ;;  %v3765_v42 = vpop.f32.mrb[45].mxu1  ;;  %v3231_v40 = vld [vmem:[%s4752_s6] ss:$0 sm:$0xff] }
 0x6e6   :  { %v1731_v44 = vpop.f32.mrb[46].mxu1 }
 0x6e7   :  { %v3766_v45 = vpop.f32.mrb[47].mxu1  ;;  %3770 = vmatmul.mubr.msk.bf16.vlgmr.msra.gmra.mrb[28].mxu0 %vm245_vm1, %v1734_v41 }
 0x6e8   :  { %3782 = vmatpush3.bf16.msra.mxu0 %v1836_v43  ;;  %3783 = vmatprep.mubr.msk.bf16.mxu0 %vm4038_vm2, %v4037_v9 }
 0x6e9   :  { %3795 = vmatprep.subr.bf16.mxu0 %v4037_v9 }
 0x6ec   :  { %v1823_v47 = vpop.f32.mrb[48].mxu1 }
 0x6ed   :  { %v1829_v48 = vpack.c.bf16 %v1823_v47, %v1823_v47  ;;  %v3779_v49 = vpop.f32.mrb[49].mxu1 }
 0x6ee   :  { %v1826_v51 = vpop.f32.mrb[50].mxu1  ;;  %v3235_v49 = vld [vmem:[%s4754_s8 + $0x4] sm:$0xf] }
 0x6ef   :  { %v3780_v52 = vpop.f32.mrb[51].mxu1  ;;  %3784 = vmatmul.mubr.msk.bf16.vlgmr.msra.gmra.mrb[32].mxu0 %vm245_vm1, %v1829_v48  ;;  %v3233_v51 = vld [vmem:[%s4753_s7 + $0x1] sm:$0x1]  ;;  %v2277_v53 = vsel %vm252_vm0, %v3235_v49, 0  ;;  %v3260_v49 = vld [vmem:[%s4754_s8 + $0x1c] sm:$0xf] }
 0x6f0   :  { %3796 = vmatpush3.bf16.msra.mxu0 %v1931_v50  ;;  %3797 = vmatprep.mubr.msk.bf16.mxu0 %vm4038_vm2, %v4037_v9  ;;  %v2176_v52 = vld [vmem:[%s4753_s7] sm:$0x1] }
 0x6f1   :  { %3809 = vmatprep.subr.bf16.mxu0 %v4037_v9 }
 0x6f4   :  { %v1918_v54 = vpop.f32.mrb[52].mxu1 }
 0x6f5   :  { %v1924_v55 = vpack.c.bf16 %v1918_v54, %v1918_v54  ;;  %v3793_v56 = vpop.f32.mrb[53].mxu1  ;;  %v2224_v54 = vld [vmem:[%s4754_s8] sm:$0xf] }
 0x6f6   :  { %v1921_v58 = vpop.f32.mrb[54].mxu1 }
 0x6f7   :  { %v3794_v59 = vpop.f32.mrb[55].mxu1  ;;  %3798 = vmatmul.mubr.msk.bf16.vlgmr.msra.gmra.mrb[36].mxu0 %vm245_vm1, %v1924_v55  ;;  %v2323_v55 = vsel %vm252_vm0, %v2224_v54, 0 }
 0x6f8   :  { %3810 = vmatpush3.bf16.msra.mxu0 %v2026_v57  ;;  %3811 = vmatprep.mubr.msk.bf16.mxu0 %vm4038_vm2, %v4037_v9 }
 0x6f9   :  { %3823 = vmatprep.subr.bf16.mxu0 %v4037_v9 }
 0x6fc   :  { %v2013_v61 = vpop.f32.mrb[56].mxu1 }
 0x6fd   :  { %v2019_v62 = vpack.c.bf16 %v2013_v61, %v2013_v61  ;;  %v3807_v63 = vpop.f32.mrb[57].mxu1 }
 0x6fe   :  { %v2016_v5 = vpop.f32.mrb[58].mxu1 }
 0x6ff   :  { %v3808_v10 = vpop.f32.mrb[59].mxu1  ;;  %3812 = vmatmul.mubr.msk.bf16.vlgmr.msra.gmra.mrb[40].mxu0 %vm245_vm1, %v2019_v62 }
 0x700   :  { %3824 = vmatpush3.bf16.msra.mxu0 %v2121_v4  ;;  %3825 = vmatprep.mubr.msk.bf16.mxu0 %vm4038_vm2, %v4037_v9  ;;  %v3238_v10 = vld [vmem:[%s4753_s7 + $0x2] sm:$0x1] }
 0x701   :  { %3835 = vmatprep.subr.bf16.mxu0 %v4037_v9 }
 0x704   :  { %v2108_v11 = vpop.f32.mrb[60].mxu1 }
 0x705   :  { %v2114_v12 = vpack.c.bf16 %v2108_v11, %v2108_v11  ;;  %v3821_v13 = vpop.f32.mrb[61].mxu1  ;;  %v3242_v11 = vld [vmem:[%s4753_s7 + $0x3] sm:$0x1] }
 0x706   :  { %v2111_v14 = vpop.f32.mrb[62].mxu1  ;;  %v3250_v13 = vld [vmem:[%s4753_s7 + $0x5] sm:$0x1] }
 0x707   :  { %v3822_v15 = vpop.f32.mrb[63].mxu1  ;;  %3826 = vmatmul.mubr.msk.bf16.vlgmr.msra.gmra.mrb[44].mxu0 %vm245_vm1, %v2114_v12  ;;  %v3246_v12 = vld [vmem:[%s4753_s7 + $0x4] sm:$0x1]  ;;  %v3254_v14 = vld [vmem:[%s4753_s7 + $0x6] sm:$0x1] }
 0x708   :  { %3837 = vmatprep.mubr.msk.bf16.mxu0 %vm4038_vm2, %v4037_v9  ;;  %v3258_v15 = vld [vmem:[%s4753_s7 + $0x7] sm:$0x1] }
 0x7aa   :  { %v1587_v16 = vpop.f32.mrb[20].mxu0 }
 0x7ab   :  { %v1593_v17 = vadd.f32 %v1587_v16, %v4530_v28  ;;  %v3743_v18 = vpop.f32.mrb[21].mxu0  ;;  %v3262_v16 = vld [vmem:[%s4753_s7 + $0x8] sm:$0x1] }
 0x7ac   :  { %v1590_v19 = vpop.f32.mrb[22].mxu0 }
 0x7ad   :  { %v3744_v20 = vpop.f32.mrb[23].mxu0 }
 0x7b2   :  { %v1682_v21 = vpop.f32.mrb[24].mxu0 }
 0x7b3   :  { %v1688_v22 = vadd.f32 %v1682_v21, %v1593_v17  ;;  %v3757_v23 = vpop.f32.mrb[25].mxu0  ;;  %v3240_v17 = vld [vmem:[%s4754_s8 + $0x8] sm:$0xf] }
 0x7b4   :  { %v1685_v24 = vpop.f32.mrb[26].mxu0  ;;  %v2417_v18 = vsel %vm252_vm0, %v3240_v17, 0 }
 0x7b5   :  { %v3758_v25 = vpop.f32.mrb[27].mxu0 }
 0x7ba   :  { %v1777_v26 = vpop.f32.mrb[28].mxu0 }
 0x7bb   :  { %v1783_v27 = vadd.f32 %v1777_v26, %v1688_v22  ;;  %v3771_v29 = vpop.f32.mrb[29].mxu0 }
 0x7bc   :  { %v1780_v30 = vpop.f32.mrb[30].mxu0  ;;  %v3244_v29 = vld [vmem:[%s4754_s8 + $0xc] sm:$0xf] }
 0x7bd   :  { %v3772_v31 = vpop.f32.mrb[31].mxu0 }
 0x7c2   :  { %v1872_v32 = vpop.f32.mrb[32].mxu0 }
 0x7c3   :  { %v1878_v0 = vadd.f32 %v1872_v32, %v1783_v27  ;;  %v3785_v1 = vpop.f32.mrb[33].mxu0 }
 0x7c4   :  { %v1875_v2 = vpop.f32.mrb[34].mxu0 }
 0x7c5   :  { %v3786_v3 = vpop.f32.mrb[35].mxu0 }
 0x7c6   :  { %v3248_v3 = vld [vmem:[%s4754_s8 + $0x10] sm:$0xf] }
 0x7ca   :  { %v1967_v6 = vpop.f32.mrb[36].mxu0 }
 0x7cb   :  { %v1973_v28 = vadd.f32 %v1967_v6, %v1878_v0  ;;  %v3799_v7 = vpop.f32.mrb[37].mxu0  ;;  %v2512_v0 = vsel %vm252_vm0, %v3244_v29, 0 }
 0x7cc   :  { %v1970_v8 = vpop.f32.mrb[38].mxu0 }
 0x7cd   :  { %v3800_v33 = vpop.f32.mrb[39].mxu0  ;;  %v2607_v8 = vsel %vm252_vm0, %v3248_v3, 0 }
 0x7d2   :  { %v2062_v34 = vpop.f32.mrb[40].mxu0 }
 0x7d3   :  { %v2068_v35 = vadd.f32 %v2062_v34, %v1973_v28  ;;  %v3813_v36 = vpop.f32.mrb[41].mxu0 }
 0x7d4   :  { %v2065_v37 = vpop.f32.mrb[42].mxu0 }
 0x7d5   :  { %v3814_v38 = vpop.f32.mrb[43].mxu0 }
 0x7da   :  { %v2157_v39 = vpop.f32.mrb[44].mxu0 }
 0x7db   :  { %v2163_v41 = vadd.f32 %v2157_v39, %v2068_v35  ;;  %v3827_v42 = vpop.f32.mrb[45].mxu0  ;;  %v3252_v35 = vld [vmem:[%s4754_s8 + $0x14] sm:$0xf] }
 0x7dc   :  { %v2160_v43 = vpop.f32.mrb[46].mxu0  ;;  %v2702_v39 = vsel %vm252_vm0, %v3252_v35, 0  ;;  %v3256_v42 = vld [vmem:[%s4754_s8 + $0x18] sm:$0xf] }
 0x7dd   :  { %v2171_v44 = vadd.f32 %v3231_v40, %v2163_v41  ;;  %v3828_v45 = vpop.f32.mrb[47].mxu0 }
 0x7df   :  { %vm2172_vm8 = vcmp.ge.f32.partialorder %v2171_v44, 0.0  ;;  %v2173_v46 = vmul.f32 0.01, %v2171_v44 }
 0x7e1   :  { %v2174_v47 = vsel %vm2172_vm8, %v2171_v44, %v2173_v46  ;;  %v2797_v46 = vsel %vm252_vm0, %v3256_v42, 0 }
 0x7e2   :  { %v2175_v48 = vpack.c.bf16 %v2174_v47, %v2174_v47 }
 0x7e4   :  { %v2181_v50 = vsel %vm252_vm0, %v2175_v48, 0 }
 0x7e5   :  { %3830 = vmatpush3.bf16.msra.mxu1 %v2181_v50  ;;  %3836 = vmatpush3.bf16.msra.mxu0 %v2181_v50 }
 0x7e6   :  { %3841 = vmatprep.subr.bf16.mxu1 %v4037_v9  ;;  %3847 = vmatprep.subr.bf16.mxu0 %v4037_v9 }
 0x7e8   :  { %3838 = vmatmul.mubr.msk.bf16.vlgmr.msra.gmra.mrb[48].mxu0 %vm245_vm1, %v3233_v51  ;;  %3832 = vmatmul.mubr.msk.bf16.vlgmr.msra.gmra.mrb[64].mxu1 %vm245_vm1, %v2176_v52 }
 0x7e9   :  { %3842 = vmatpush3.bf16.msra.mxu1 %v2277_v53  ;;  %3843 = vmatprep.mubr.msk.bf16.mxu1 %vm4038_vm2, %v4037_v9  ;;  %v2892_v53 = vsel %vm252_vm0, %v3260_v49, 0 }
 0x7ea   :  { %3853 = vmatprep.subr.bf16.mxu1 %v4037_v9  ;;  %3849 = vmatprep.mubr.msk.bf16.mxu0 %vm4038_vm2, %v4037_v9 }
 0x7eb   :  { %3848 = vmatpush3.bf16.msra.mxu0 %v2323_v55 }
 0x7ec   :  { %3859 = vmatprep.subr.bf16.mxu0 %v4037_v9 }
 0x8bb   :  { %v2264_v56 = vpop.f32.mrb[48].mxu0  ;;  %v2217_v57 = vpop.f32.mrb[64].mxu1 }
 0x8bc   :  { %v2270_v58 = vpack.c.bf16 %v2264_v56, %v2264_v56  ;;  %v3839_v59 = vpop.f32.mrb[49].mxu0  ;;  %v2223_v60 = vpack.c.bf16 %v2217_v57, %v2217_v57  ;;  %v3833_v61 = vpop.f32.mrb[65].mxu1  ;;  %v3264_v56 = vld [vmem:[%s4754_s8 + $0x20] sm:$0xf] }
 0x8bd   :  { %v2267_v62 = vpop.f32.mrb[50].mxu0  ;;  %v2220_v63 = vpop.f32.mrb[66].mxu1 }
 0x8be   :  { %3844 = vmatmul.mubr.msk.bf16.vlgmr.msra.gmra.mrb[68].mxu1 %vm245_vm1, %v2270_v58  ;;  %v3840_v4 = vpop.f32.mrb[51].mxu0  ;;  %3850 = vmatmul.mubr.msk.bf16.vlgmr.msra.gmra.mrb[52].mxu0 %vm245_vm1, %v2223_v60  ;;  %v3834_v5 = vpop.f32.mrb[67].mxu1  ;;  %v2987_v60 = vsel %vm252_vm0, %v3264_v56, 0 }
 0x8bf   :  { %3854 = vmatpush3.bf16.msra.mxu1 %v2181_v50  ;;  %3855 = vmatprep.mubr.msk.bf16.mxu1 %vm4038_vm2, %v4037_v9 }
 0x8c0   :  { %3865 = vmatprep.subr.bf16.mxu1 %v4037_v9  ;;  %3861 = vmatprep.mubr.msk.bf16.mxu0 %vm4038_vm2, %v4037_v9 }
 0x8c1   :  { %3860 = vmatpush3.bf16.msra.mxu0 %v2417_v18 }
 0x8c2   :  { %3871 = vmatprep.subr.bf16.mxu0 %v4037_v9 }
 0x8c6   :  { %3856 = vmatmul.mubr.msk.bf16.vlgmr.msra.gmra.mrb[72].mxu1 %vm245_vm1, %v3238_v10 }
 0x8c7   :  { %3866 = vmatpush3.bf16.msra.mxu1 %v2181_v50  ;;  %3867 = vmatprep.mubr.msk.bf16.mxu1 %vm4038_vm2, %v4037_v9 }
 0x8c8   :  { %3877 = vmatprep.subr.bf16.mxu1 %v4037_v9 }
 0x8ce   :  { %3868 = vmatmul.mubr.msk.bf16.vlgmr.msra.gmra.mrb[76].mxu1 %vm245_vm1, %v3242_v11 }
 0x8cf   :  { %3878 = vmatpush3.bf16.msra.mxu1 %v2181_v50  ;;  %3879 = vmatprep.mubr.msk.bf16.mxu1 %vm4038_vm2, %v4037_v9 }
 0x8d0   :  { %3889 = vmatprep.subr.bf16.mxu1 %v4037_v9 }
 0x8d6   :  { %3880 = vmatmul.mubr.msk.bf16.vlgmr.msra.gmra.mrb[80].mxu1 %vm245_vm1, %v3246_v12  ;;  %v3042_v12 = vld [vmem:[%s4756_s10] sm:$0xf] }
 0x8d7   :  { %3890 = vmatpush3.bf16.msra.mxu1 %v2181_v50  ;;  %3891 = vmatprep.mubr.msk.bf16.mxu1 %vm4038_vm2, %v4037_v9 }
 0x8d8   :  { %3901 = vmatprep.subr.bf16.mxu1 %v4037_v9 }
 0x8de   :  { %3892 = vmatmul.mubr.msk.bf16.vlgmr.msra.gmra.mrb[84].mxu1 %vm245_vm1, %v3250_v13  ;;  %v3054_v13 = vsel %vm252_vm0, %v3042_v12, 0 }
 0x8df   :  { %3902 = vmatpush3.bf16.msra.mxu1 %v2181_v50  ;;  %3903 = vmatprep.mubr.msk.bf16.mxu1 %vm4038_vm2, %v4037_v9 }
 0x8e0   :  { %3913 = vmatprep.subr.bf16.mxu1 %v4037_v9 }
 0x8e6   :  { %3904 = vmatmul.mubr.msk.bf16.vlgmr.msra.gmra.mrb[88].mxu1 %vm245_vm1, %v3254_v14 }
 0x8e7   :  { %3914 = vmatpush3.bf16.msra.mxu1 %v2181_v50  ;;  %3915 = vmatprep.mubr.msk.bf16.mxu1 %vm4038_vm2, %v4037_v9 }
 0x8e8   :  { %3925 = vmatprep.subr.bf16.mxu1 %v4037_v9 }
 0x8ee   :  { %3916 = vmatmul.mubr.msk.bf16.vlgmr.msra.gmra.mrb[92].mxu1 %vm245_vm1, %v3258_v15 }
 0x8ef   :  { %3926 = vmatpush3.bf16.msra.mxu1 %v2181_v50  ;;  %3927 = vmatprep.mubr.msk.bf16.mxu1 %vm4038_vm2, %v4037_v9 }
 0x8f0   :  { %3937 = vmatprep.subr.bf16.mxu1 %v4037_v9 }
 0x8f6   :  { %3928 = vmatmul.mubr.msk.bf16.vlgmr.msra.gmra.mrb[96].mxu1 %vm245_vm1, %v3262_v16 }
 0x8f7   :  { %3939 = vmatprep.mubr.msk.bf16.mxu1 %vm4038_vm2, %v4037_v9  ;;  %3938 = vmatpush3.bf16.msra.mxu1 %v3054_v13 }
 0x991   :  { %v2313_v19 = vpop.f32.mrb[68].mxu1  ;;  %v2359_v20 = vpop.f32.mrb[52].mxu0 }
 0x992   :  { %v3845_v21 = vpop.f32.mrb[69].mxu1  ;;  %v4672_v22 = vadd.f32 %v2359_v20, %v2313_v19  ;;  %v3851_v23 = vpop.f32.mrb[53].mxu0 }
 0x993   :  { %v2316_v24 = vpop.f32.mrb[70].mxu1  ;;  %v2362_v25 = vpop.f32.mrb[54].mxu0 }
 0x994   :  { %v3846_v26 = vpop.f32.mrb[71].mxu1  ;;  %v3852_v27 = vpop.f32.mrb[55].mxu0 }
 0x999   :  { %v2404_v30 = vpop.f32.mrb[72].mxu1 }
 0x99a   :  { %v2410_v31 = vpack.c.bf16 %v2404_v30, %v2404_v30  ;;  %v3857_v32 = vpop.f32.mrb[73].mxu1 }
 0x99b   :  { %v2407_v1 = vpop.f32.mrb[74].mxu1 }
 0x99c   :  { %3862 = vmatmul.mubr.msk.bf16.vlgmr.msra.gmra.mrb[56].mxu0 %vm245_vm1, %v2410_v31  ;;  %v3858_v2 = vpop.f32.mrb[75].mxu1 }
 0x99d   :  { %3872 = vmatpush3.bf16.msra.mxu0 %v2512_v0  ;;  %3873 = vmatprep.mubr.msk.bf16.mxu0 %vm4038_vm2, %v4037_v9 }
 0x99e   :  { %3883 = vmatprep.subr.bf16.mxu0 %v4037_v9 }
 0x9a1   :  { %v2499_v6 = vpop.f32.mrb[76].mxu1 }
 0x9a2   :  { %v2505_v28 = vpack.c.bf16 %v2499_v6, %v2499_v6  ;;  %v3869_v7 = vpop.f32.mrb[77].mxu1 }
 0x9a3   :  { %v2502_v33 = vpop.f32.mrb[78].mxu1 }
 0x9a4   :  { %3874 = vmatmul.mubr.msk.bf16.vlgmr.msra.gmra.mrb[60].mxu0 %vm245_vm1, %v2505_v28  ;;  %v3870_v34 = vpop.f32.mrb[79].mxu1 }
 0x9a5   :  { %3884 = vmatpush3.bf16.msra.mxu0 %v2607_v8  ;;  %3885 = vmatprep.mubr.msk.bf16.mxu0 %vm4038_vm2, %v4037_v9 }
 0x9a6   :  { %3895 = vmatprep.subr.bf16.mxu0 %v4037_v9 }
 0x9a9   :  { %v2594_v36 = vpop.f32.mrb[80].mxu1 }
 0x9aa   :  { %v2600_v37 = vpack.c.bf16 %v2594_v36, %v2594_v36  ;;  %v3881_v38 = vpop.f32.mrb[81].mxu1 }
 0x9ab   :  { %v2597_v40 = vpop.f32.mrb[82].mxu1 }
 0x9ac   :  { %3886 = vmatmul.mubr.msk.bf16.vlgmr.msra.gmra.mrb[64].mxu0 %vm245_vm1, %v2600_v37  ;;  %v3882_v41 = vpop.f32.mrb[83].mxu1  ;;  %v3266_v37 = vld [vmem:[%s4755_s9] ss:$0 sm:$0xff]  ;;  %s4013_s9 = scalar_lea.vmem %s3105_s20, 32 }
 0x9ad   :  { %3896 = vmatpush3.bf16.msra.mxu0 %v2702_v39  ;;  %3897 = vmatprep.mubr.msk.bf16.mxu0 %vm4038_vm2, %v4037_v9  ;;  %p4014_p0 = scmp.ne.s32.totalorder %s3105_s20, %s4013_s9  ;;  %p4019_p2 = scmp.lt.s32.totalorder %s4013_s9, %s4013_s9 }
 0x9ae   :  { %3907 = vmatprep.subr.bf16.mxu0 %v4037_v9 }
 0x9af   :  { %p4020_p3 = por %p4019_p2, %p4018_p1 }
 0x9b1   :  { %v2689_v43 = vpop.f32.mrb[84].mxu1  ;;  %p4021_p4 = pnand %p4020_p3, %p4014_p0 }
 0x9b2   :  { %v2695_v44 = vpack.c.bf16 %v2689_v43, %v2689_v43  ;;  %v3893_v45 = vpop.f32.mrb[85].mxu1 }
 0x9b3   :  { %v2692_v47 = vpop.f32.mrb[86].mxu1 }
 0x9b4   :  { %3898 = vmatmul.mubr.msk.bf16.vlgmr.msra.gmra.mrb[68].mxu0 %vm245_vm1, %v2695_v44  ;;  %v3894_v48 = vpop.f32.mrb[87].mxu1 }
 0x9b5   :  { %3908 = vmatpush3.bf16.msra.mxu0 %v2797_v46  ;;  %3909 = vmatprep.mubr.msk.bf16.mxu0 %vm4038_vm2, %v4037_v9  ;;  %v3267_v46 = vld [vmem:[%s4757_s11] ss:$0 sm:$0xff] }
 0x9b6   :  { %3919 = vmatprep.subr.bf16.mxu0 %v4037_v9 }
 0x9b9   :  { %v2784_v50 = vpop.f32.mrb[88].mxu1 }
 0x9ba   :  { %v2790_v51 = vpack.c.bf16 %v2784_v50, %v2784_v50  ;;  %v3905_v52 = vpop.f32.mrb[89].mxu1 }
 0x9bb   :  { %v2787_v54 = vpop.f32.mrb[90].mxu1 }
 0x9bc   :  { %3910 = vmatmul.mubr.msk.bf16.vlgmr.msra.gmra.mrb[72].mxu0 %vm245_vm1, %v2790_v51  ;;  %v3906_v55 = vpop.f32.mrb[91].mxu1 }
 0x9bd   :  { %3920 = vmatpush3.bf16.msra.mxu0 %v2892_v53  ;;  %3921 = vmatprep.mubr.msk.bf16.mxu0 %vm4038_vm2, %v4037_v9 }
 0x9be   :  { %3931 = vmatprep.subr.bf16.mxu0 %v4037_v9 }
 0x9c1   :  { %v2879_v57 = vpop.f32.mrb[92].mxu1 }
 0x9c2   :  { %v2885_v58 = vpack.c.bf16 %v2879_v57, %v2879_v57  ;;  %v3917_v59 = vpop.f32.mrb[93].mxu1 }
 0x9c3   :  { %v2882_v61 = vpop.f32.mrb[94].mxu1 }
 0x9c4   :  { %3922 = vmatmul.mubr.msk.bf16.vlgmr.msra.gmra.mrb[76].mxu0 %vm245_vm1, %v2885_v58  ;;  %v3918_v62 = vpop.f32.mrb[95].mxu1 }
 0x9c5   :  { %3932 = vmatpush3.bf16.msra.mxu0 %v2987_v60  ;;  %3933 = vmatprep.mubr.msk.bf16.mxu0 %vm4038_vm2, %v4037_v9 }
 0x9c9   :  { %v2974_v63 = vpop.f32.mrb[96].mxu1 }
 0x9ca   :  { %v2980_v4 = vpack.c.bf16 %v2974_v63, %v2974_v63  ;;  %v3929_v5 = vpop.f32.mrb[97].mxu1 }
 0x9cb   :  { %v2977_v10 = vpop.f32.mrb[98].mxu1 }
 0x9cc   :  { %3934 = vmatmul.mubr.msk.bf16.vlgmr.msra.gmra.mrb[80].mxu0 %vm245_vm1, %v2980_v4  ;;  %v3930_v11 = vpop.f32.mrb[99].mxu1 }
 0xa6f   :  { %v2453_v14 = vpop.f32.mrb[56].mxu0 }
 0xa70   :  { %v2459_v15 = vadd.f32 %v2453_v14, %v4672_v22  ;;  %v3863_v16 = vpop.f32.mrb[57].mxu0 }
 0xa71   :  { %v2456_v17 = vpop.f32.mrb[58].mxu0 }
 0xa72   :  { %v3864_v9 = vpop.f32.mrb[59].mxu0 }
 0xa77   :  { %v2548_v18 = vpop.f32.mrb[60].mxu0 }
 0xa78   :  { %v2554_v19 = vadd.f32 %v2548_v18, %v2459_v15  ;;  %v3875_v20 = vpop.f32.mrb[61].mxu0 }
 0xa79   :  { %v2551_v21 = vpop.f32.mrb[62].mxu0 }
 0xa7a   :  { %v3876_v23 = vpop.f32.mrb[63].mxu0 }
 0xa7f   :  { %v2643_v24 = vpop.f32.mrb[64].mxu0 }
 0xa80   :  { %v2649_v25 = vadd.f32 %v2643_v24, %v2554_v19  ;;  %v3887_v26 = vpop.f32.mrb[65].mxu0 }
 0xa81   :  { %v2646_v27 = vpop.f32.mrb[66].mxu0 }
 0xa82   :  { %v3888_v29 = vpop.f32.mrb[67].mxu0 }
 0xa87   :  { %v2738_v30 = vpop.f32.mrb[68].mxu0 }
 0xa88   :  { %v2744_v31 = vadd.f32 %v2738_v30, %v2649_v25  ;;  %v3899_v32 = vpop.f32.mrb[69].mxu0 }
 0xa89   :  { %v2741_v0 = vpop.f32.mrb[70].mxu0 }
 0xa8a   :  { %v3900_v1 = vpop.f32.mrb[71].mxu0 }
 0xa8f   :  { %v2833_v2 = vpop.f32.mrb[72].mxu0 }
 0xa90   :  { %v2839_v22 = vadd.f32 %v2833_v2, %v2744_v31  ;;  %v3911_v3 = vpop.f32.mrb[73].mxu0 }
 0xa91   :  { %v2836_v6 = vpop.f32.mrb[74].mxu0 }
 0xa92   :  { %v3912_v28 = vpop.f32.mrb[75].mxu0 }
 0xa97   :  { %v2928_v7 = vpop.f32.mrb[76].mxu0 }
 0xa98   :  { %v2934_v8 = vadd.f32 %v2928_v7, %v2839_v22  ;;  %v3923_v33 = vpop.f32.mrb[77].mxu0 }
 0xa99   :  { %v2931_v34 = vpop.f32.mrb[78].mxu0 }
 0xa9a   :  { %v3924_v35 = vpop.f32.mrb[79].mxu0 }
 0xa9f   :  { %v3023_v36 = vpop.f32.mrb[80].mxu0 }
 0xaa0   :  { %v3029_v38 = vadd.f32 %v3023_v36, %v2934_v8  ;;  %v3935_v39 = vpop.f32.mrb[81].mxu0 }
 0xaa1   :  { %v3026_v40 = vpop.f32.mrb[82].mxu0 }
 0xaa2   :  { %v3037_v41 = vadd.f32 %v3266_v37, %v3029_v38  ;;  %v3936_v42 = vpop.f32.mrb[83].mxu0 }
 0xaa4   :  { %vm3038_vm9 = vcmp.ge.f32.partialorder %v3037_v41, 0.0  ;;  %v3039_v43 = vmul.f32 0.01, %v3037_v41 }
 0xaa6   :  { %v3040_v44 = vsel %vm3038_vm9, %v3037_v41, %v3039_v43 }
 0xaa7   :  { %v3041_v45 = vpack.c.bf16 %v3040_v44, %v3040_v44 }
 0xaa9   :  { %3940 = vmatmul.mubr.msk.bf16.vlgmr.msra.gmra.mrb[100].mxu1 %vm245_vm1, %v3041_v45 }
 0xb7c   :  { %v3090_v47 = vpop.f32.mrb[100].mxu1 }
 0xb7d   :  { %v3091_v48 = vadd.f32 %v3267_v46, %v3090_v47  ;;  %v3941_v49 = vpop.f32.mrb[101].mxu1 }
 0xb7e   :  { %v3093_v50 = vpop.f32.mrb[102].mxu1 }
 0xb7f   :  { %v3942_v51 = vpop.f32.mrb[103].mxu1  ;;  %3097 = vst.msk [vmem:[#allocation2] sm:$0x3] %vm3096_vm10, %v3091_v48 }
 0xb80   :  { %4024 = shalt.err (!%p4021_p4)
}
 0xb81   :  { %s4025_s11 = scalar_lea.hbm %s4758_s12, 32 }
 0xb82   :  { %p4026_p5 = scmp.ne.s32.totalorder %s4758_s12, %s4025_s11  ;;  %p4029_p6 = scmp.lt.u32.totalorder %s4025_s11, %s4758_s12 }
 0xb84   :  { %p4031_p7 = pnand %p4029_p6, %p4026_p5 }
 0xb86   :  { %4034 = shalt.err (!%p4031_p7)
}
 0xb87   :  { %3107 = dma.vmem_to_hbm [thread:$0]  %s3105_s20, 32, %s4758_s12, [#allocation3]  }
 0xb88   :  { %4035 = dma.done.wait [#allocation3], 32  }
 0xb89   :  { %4036 = vsyncadd [#allocation3], 4294967264 }
 0xb8a   :  { %3111 = vsyncpa [#allocation3], 1 }

</bundles_post_ra>
